<compile_context>
chip_gen: v7x
topology: tpu7x:2x2x1
jax: 0.10.0
libtpu: 0.0.40
codegen_flags: <defaults>
</compile_context>

<pallas_src>
import functools
import math

import jax
import jax.numpy as jnp
from jax.experimental import pallas as pl
from jax.experimental.pallas import tpu as pltpu


# ----------------------------- helpers -----------------------------

def _round_up(x, m):
    return (x + m - 1) // m * m


def _largest_divisor_leq(n, cap):
    cap = max(1, cap)
    best = 1
    for d in range(1, n + 1):
        if n % d == 0 and d <= cap:
            best = d
    return best


# ----------------------------- Pallas kernels -----------------------------

def _conv3x3_kernel(x_ref, w_ref, scale_ref, bias_ref, o_ref, *, th, wo, relu):
    """One (row-tile, cout-tile) of a 3x3 same-pad conv + folded BN + ReLU.

    x_ref:     (th + 2, wo + 2, cx)  bf16   row tile with 1-row / 1-col halo
    w_ref:     (9 * cx, tn)          bf16   taps packed into the contraction dim
    scale_ref: (1, tn)               f32    folded BatchNorm scale
    bias_ref:  (1, tn)               f32    folded BatchNorm bias
    o_ref:     (th, wo, tn)
    """
    xh = x_ref[...]
    cx = xh.shape[-1]
    taps = []
    for dy in range(3):
        for dx in range(3):
            taps.append(xh[dy:dy + th, dx:dx + wo, :].reshape(th * wo, cx))
    patch = jnp.concatenate(taps, axis=-1)                         # (th*wo, 9*cx) bf16
    acc = jnp.dot(patch, w_ref[...], preferred_element_type=jnp.float32)
    y = acc * scale_ref[...] + bias_ref[...]
    if relu:
        y = jnp.maximum(y, 0.0)
    o_ref[...] = y.reshape(th, wo, -1).astype(o_ref.dtype)


def _maxpool2x2_kernel(x_ref, o_ref):
    """x_ref: (2*th, Wo, 2*C) (W-pairs pre-merged into lanes); o_ref: (th, Wo, C)."""
    x = x_ref[...]
    two_th, wo, c2 = x.shape
    c = c2 // 2
    x = x.reshape(two_th // 2, 2, wo, c2)        # split rows into (out_row, window_row)
    r = jnp.maximum(x[:, 0], x[:, 1])            # max over the 2 window rows
    o_ref[...] = jnp.maximum(r[:, :, :c], r[:, :, c:])   # max over the 2 window cols


# ----------------------------- op wrappers -----------------------------

def maxpool2x2(x):
    """x: (N, H, W, C) -> (N, H//2, W//2, C).  Floors odd H/W (PyTorch default)."""
    N, H, W, C = x.shape
    Ho, Wo = H // 2, W // 2
    x = x[:, :2 * Ho, :2 * Wo, :]
    xm = x.reshape(N, 2 * Ho, Wo, 2 * C)         # free dim-merge: (w-pair, C) -> lanes
    itemsize = jnp.dtype(x.dtype).itemsize
    th = _largest_divisor_leq(
        Ho, max(1, (2 * 1024 * 1024) // max(1, 4 * Wo * C * itemsize)))
    return pl.pallas_call(
        _maxpool2x2_kernel,
        out_shape=jax.ShapeDtypeStruct((N, Ho, Wo, C), x.dtype),
        grid=(N, Ho // th),
        in_specs=[pl.BlockSpec((None, 2 * th, Wo, 2 * C), lambda b, r: (b, r, 0, 0))],
        out_specs=pl.BlockSpec((None, th, Wo, C), lambda b, r: (b, r, 0, 0)),
        compiler_params=pltpu.CompilerParams(
            dimension_semantics=("parallel", "parallel")),
    )(xm)


def conv3x3_bn_relu(x, w, scale, bias, *, out_dtype, relu=True):
    """3x3 same-pad conv (no bias) + folded BatchNorm affine + ReLU.

    x: (N, H, W, Cx) with Cx >= w.shape[2]; any extra input channels must be zero.
    w: (3, 3, Cin, Cout).  Returns (N, H, W, round_up(Cout, 128)); the padded output
    channels are exactly zero.
    """
    N, H, W, Cx = x.shape
    kh, kw, cin_w, cout = w.shape
    assert (kh, kw) == (3, 3) and Cx >= cin_w
    cpad = _round_up(cout, 128)
    tn = 128
    nct = cpad // tn

    # Weights: pad input channels up to Cx (zeros), output channels up to cpad, then
    # pack the 9 taps into the contraction dim.
    wk = jnp.pad(w, ((0, 0), (0, 0), (0, Cx - cin_w), (0, cpad - cout)))
    wk = wk.reshape(9 * Cx, cpad).astype(jnp.bfloat16)
    sk = jnp.pad(scale.reshape(1, cout).astype(jnp.float32), ((0, 0), (0, cpad - cout)))
    bk = jnp.pad(bias.reshape(1, cout).astype(jnp.float32), ((0, 0), (0, cpad - cout)))

    xp = jnp.pad(x.astype(jnp.bfloat16), ((0, 0), (1, 1), (1, 1), (0, 0)))

    # Row tile with a 1-row halo; M-tile sized so the in-kernel (M, 9*Cx) bf16 patch
    # stays <= ~4 MiB (VMEM-safe on v7x's 64 MiB as well as v5e/v6e).
    m_target = min(2048, max(W, (4 * 1024 * 1024) // (9 * Cx * 2)))
    th = _largest_divisor_leq(H, max(1, m_target // W))
    nrt = H // th
    if nrt == 1:
        xt = xp[:, None]                                   # (N, 1, H+2, W+2, Cx) -- free
    else:
        xt = jnp.stack([xp[:, r * th:r * th + th + 2] for r in range(nrt)], axis=1)
    # xt: (N, nrt, th + 2, W + 2, Cx); only 2 halo rows per tile are duplicated.

    kernel = functools.partial(_conv3x3_kernel, th=th, wo=W, relu=relu)
    return pl.pallas_call(
        kernel,
        out_shape=jax.ShapeDtypeStruct((N, H, W, cpad), out_dtype),
        grid=(N, nrt, nct),
        in_specs=[
            pl.BlockSpec((None, None, th + 2, W + 2, Cx),
                         lambda b, r, n: (b, r, 0, 0, 0)),
            pl.BlockSpec((9 * Cx, tn), lambda b, r, n: (0, n)),
            pl.BlockSpec((1, tn), lambda b, r, n: (0, n)),
            pl.BlockSpec((1, tn), lambda b, r, n: (0, n)),
        ],
        out_specs=pl.BlockSpec((None, th, W, tn), lambda b, r, n: (b, r, 0, n)),
        compiler_params=pltpu.CompilerParams(
            dimension_semantics=("parallel", "parallel", "parallel"),
            vmem_limit_bytes=32 * 1024 * 1024),
    )(xt, wk, sk, bk)


# ----------------------------- Down forward -----------------------------

def down_forward(params, x_nchw):
    """Down: MaxPool2d(2) -> DoubleConv.  External I/O is NCHW float32 (PyTorch layout)."""
    x = jnp.transpose(x_nchw, (0, 2, 3, 1)).astype(jnp.bfloat16)   # NCHW -> NHWC, bf16
    x = maxpool2x2(x)
    x = conv3x3_bn_relu(x, params["w1"], params["s1"], params["b1"],
                        out_dtype=jnp.bfloat16)
    x = conv3x3_bn_relu(x, params["w2"], params["s2"], params["b2"],
                        out_dtype=jnp.float32)
    cout = params["w2"].shape[-1]
    x = x[..., :cout]                                              # drop lane padding
    return jnp.transpose(x, (0, 3, 1, 2))                          # NHWC -> NCHW


# ----------------------------- parameters -----------------------------

def _bn_fold(key, c):
    # TODO(synk): BatchNorm is folded in eval mode (running stats); training-mode batch
    # statistics are not implemented.
    k1, k2, k3, k4 = jax.random.split(key, 4)
    gamma = 1.0 + 0.05 * jax.random.normal(k1, (c,), jnp.float32)
    beta = 0.05 * jax.random.normal(k2, (c,), jnp.float32)
    mean = 0.05 * jax.random.normal(k3, (c,), jnp.float32)
    var = 1.0 + 0.05 * jnp.abs(jax.random.normal(k4, (c,), jnp.float32))
    scale = gamma * jax.lax.rsqrt(var + 1e-5)
    bias = beta - mean * scale
    return scale, bias


def init_down_params(key, in_channels, out_channels, mid_channels=None):
    cmid = out_channels if mid_channels is None else mid_channels
    k1, k2, k3, k4 = jax.random.split(key, 4)

    def conv_w(kk, ci, co):
        return jax.random.normal(kk, (3, 3, ci, co), jnp.float32) / math.sqrt(9 * ci)

    s1, b1 = _bn_fold(k2, cmid)
    s2, b2 = _bn_fold(k4, out_channels)
    return {"w1": conv_w(k1, in_channels, cmid), "s1": s1, "b1": b1,
            "w2": conv_w(k3, cmid, out_channels), "s2": s2, "b2": b2}


# ----------------------------- pure-JAX reference -----------------------------

def down_reference(params, x_nchw):
    """Reference using the same bf16-rounded inputs/weights, f32 math."""
    x = jnp.transpose(x_nchw, (0, 2, 3, 1)).astype(jnp.bfloat16).astype(jnp.float32)
    N, H, W, C = x.shape
    Ho, Wo = H // 2, W // 2
    x = x[:, :2 * Ho, :2 * Wo, :].reshape(N, Ho, 2, Wo, 2, C).max(axis=(2, 4))

    def conv(x, w, s, b):
        w = w.astype(jnp.bfloat16).astype(jnp.float32)
        y = jax.lax.conv_general_dilated(
            x, w, window_strides=(1, 1), padding="SAME",
            dimension_numbers=("NHWC", "HWIO", "NHWC"))
        return jnp.maximum(y * s.reshape(1, 1, 1, -1) + b.reshape(1, 1, 1, -1), 0.0)

    x = conv(x, params["w1"], params["s1"], params["b1"])
    x = conv(x, params["w2"], params["s2"], params["b2"])
    return jnp.transpose(x, (0, 3, 1, 2))


# ----------------------------- main -----------------------------

if __name__ == "__main__":
    key = jax.random.PRNGKey(0)
    kp, kx = jax.random.split(key)
    in_channels, out_channels = 4, 8

    params = init_down_params(kp, in_channels, out_channels)
    x = jax.random.normal(kx, (2, in_channels, 16, 16), jnp.float32)

    fwd = jax.jit(down_forward)
    y = fwd(params, x)
    jax.block_until_ready(y)

    assert y.shape == (2, out_channels, 8, 8), y.shape
    assert bool(jnp.all(jnp.isfinite(y)))

    ref = down_reference(params, x)
    err = float(jnp.max(jnp.abs(y - ref)))
    tol = 2e-2 * float(jnp.max(jnp.abs(ref))) + 1e-3
    assert err <= tol, (err, tol)

    print("KERNEL_OK")
</pallas_src>

<mosaic_0001>
module attributes {stable_mosaic.version = 11 : i64} {
  func.func @_maxpool2x2_kernel(%arg0: i32, %arg1: i32, %arg2: memref<1x16x8x8xbf16, #tpu.memory_space<vmem>>, %arg3: memref<1x8x8x4xbf16, #tpu.memory_space<vmem>>) attributes {dimension_semantics = [#tpu.dimension_semantics<parallel>, #tpu.dimension_semantics<parallel>], iteration_bounds = array<i64: 2, 1>, scalar_prefetch = 0 : i64, scratch_operands = 0 : i64, tpu.core_type = #tpu.core_type<tc>, window_params = [{transform_indices = @transform_0, window_bounds = array<i64: 1, 16, 8, 8>}, {transform_indices = @transform_1, window_bounds = array<i64: 1, 8, 8, 4>}]} {
    %c0 = arith.constant 0 : index
    %c0_0 = arith.constant 0 : index
    %c0_1 = arith.constant 0 : index
    %c0_2 = arith.constant 0 : index
    %0 = vector.load %arg2[%c0, %c0_0, %c0_1, %c0_2] : memref<1x16x8x8xbf16, #tpu.memory_space<vmem>>, vector<1x16x8x8xbf16>
    %1 = vector.shape_cast %0 : vector<1x16x8x8xbf16> to vector<16x8x8xbf16>
    %2 = vector.shape_cast %1 : vector<16x8x8xbf16> to vector<8x2x8x8xbf16>
    %3 = vector.extract_strided_slice %2 {offsets = [0, 0, 0, 0], sizes = [8, 1, 8, 8], strides = [1, 1, 1, 1]} : vector<8x2x8x8xbf16> to vector<8x1x8x8xbf16>
    %4 = vector.shape_cast %3 : vector<8x1x8x8xbf16> to vector<8x8x8xbf16>
    %5 = vector.extract_strided_slice %2 {offsets = [0, 1, 0, 0], sizes = [8, 1, 8, 8], strides = [1, 1, 1, 1]} : vector<8x2x8x8xbf16> to vector<8x1x8x8xbf16>
    %6 = vector.shape_cast %5 : vector<8x1x8x8xbf16> to vector<8x8x8xbf16>
    %7 = arith.maximumf %4, %6 : vector<8x8x8xbf16>
    %8 = vector.extract_strided_slice %7 {offsets = [0, 0, 0], sizes = [8, 8, 4], strides = [1, 1, 1]} : vector<8x8x8xbf16> to vector<8x8x4xbf16>
    %9 = vector.extract_strided_slice %7 {offsets = [0, 0, 4], sizes = [8, 8, 4], strides = [1, 1, 1]} : vector<8x8x8xbf16> to vector<8x8x4xbf16>
    %10 = arith.maximumf %8, %9 : vector<8x8x4xbf16>
    %c0_3 = arith.constant 0 : index
    %c0_4 = arith.constant 0 : index
    %c0_5 = arith.constant 0 : index
    %c0_6 = arith.constant 0 : index
    %11 = vector.load %arg3[%c0_3, %c0_4, %c0_5, %c0_6] : memref<1x8x8x4xbf16, #tpu.memory_space<vmem>>, vector<1x8x8x4xbf16>
    %12 = vector.shape_cast %11 : vector<1x8x8x4xbf16> to vector<8x8x4xbf16>
    %13 = vector.shape_cast %10 : vector<8x8x4xbf16> to vector<1x8x8x4xbf16>
    tpu.vector_store %arg3[%c0_3, %c0_4, %c0_5, %c0_6], %13 {strides = array<i32>} : memref<1x8x8x4xbf16, #tpu.memory_space<vmem>>, vector<1x8x8x4xbf16>,
    return
  }
  func.func @transform_0(%arg0: i32, %arg1: i32) -> (i32, i32, i32, i32) {
    %c0_i32 = arith.constant 0 : i32
    %c0_i32_0 = arith.constant 0 : i32
    %c0_i32_1 = arith.constant 0 : i32
    return %arg0, %arg1, %c0_i32, %c0_i32_0 : i32, i32, i32, i32
  }
  func.func @transform_1(%arg0: i32, %arg1: i32) -> (i32, i32, i32, i32) {
    %c0_i32 = arith.constant 0 : i32
    %c0_i32_0 = arith.constant 0 : i32
    %c0_i32_1 = arith.constant 0 : i32
    return %arg0, %arg1, %c0_i32, %c0_i32_0 : i32, i32, i32, i32
  }
}

module attributes {stable_mosaic.version = 11 : i64} {
  func.func @_conv3x3_kernel(%arg0: i32, %arg1: i32, %arg2: i32, %arg3: memref<1x1x10x10x4xbf16, #tpu.memory_space<vmem>>, %arg4: memref<36x128xbf16, #tpu.memory_space<vmem>>, %arg5: memref<1x128xf32, #tpu.memory_space<vmem>>, %arg6: memref<1x128xf32, #tpu.memory_space<vmem>>, %arg7: memref<1x8x8x128xbf16, #tpu.memory_space<vmem>>) attributes {dimension_semantics = [#tpu.dimension_semantics<parallel>, #tpu.dimension_semantics<parallel>, #tpu.dimension_semantics<parallel>], iteration_bounds = array<i64: 2, 1, 1>, scalar_prefetch = 0 : i64, scratch_operands = 0 : i64, tpu.core_type = #tpu.core_type<tc>, window_params = [{transform_indices = @transform_0, window_bounds = array<i64: 1, 1, 10, 10, 4>}, {transform_indices = @transform_1, window_bounds = array<i64: 36, 128>}, {transform_indices = @transform_2, window_bounds = array<i64: 1, 128>}, {transform_indices = @transform_3, window_bounds = array<i64: 1, 128>}, {transform_indices = @transform_4, window_bounds = array<i64: 1, 8, 8, 128>}]} {
    %c0 = arith.constant 0 : index
    %c0_0 = arith.constant 0 : index
    %c0_1 = arith.constant 0 : index
    %c0_2 = arith.constant 0 : index
    %c0_3 = arith.constant 0 : index
    %0 = vector.load %arg3[%c0, %c0_0, %c0_1, %c0_2, %c0_3] : memref<1x1x10x10x4xbf16, #tpu.memory_space<vmem>>, vector<1x1x10x10x4xbf16>
    %1 = vector.shape_cast %0 : vector<1x1x10x10x4xbf16> to vector<10x10x4xbf16>
    %2 = vector.extract_strided_slice %1 {offsets = [0, 0, 0], sizes = [8, 8, 4], strides = [1, 1, 1]} : vector<10x10x4xbf16> to vector<8x8x4xbf16>
    %3 = vector.shape_cast %2 : vector<8x8x4xbf16> to vector<64x4xbf16>
    %4 = vector.extract_strided_slice %1 {offsets = [0, 1, 0], sizes = [8, 8, 4], strides = [1, 1, 1]} : vector<10x10x4xbf16> to vector<8x8x4xbf16>
    %5 = vector.shape_cast %4 : vector<8x8x4xbf16> to vector<64x4xbf16>
    %6 = vector.extract_strided_slice %1 {offsets = [0, 2, 0], sizes = [8, 8, 4], strides = [1, 1, 1]} : vector<10x10x4xbf16> to vector<8x8x4xbf16>
    %7 = vector.shape_cast %6 : vector<8x8x4xbf16> to vector<64x4xbf16>
    %8 = vector.extract_strided_slice %1 {offsets = [1, 0, 0], sizes = [8, 8, 4], strides = [1, 1, 1]} : vector<10x10x4xbf16> to vector<8x8x4xbf16>
    %9 = vector.shape_cast %8 : vector<8x8x4xbf16> to vector<64x4xbf16>
    %10 = vector.extract_strided_slice %1 {offsets = [1, 1, 0], sizes = [8, 8, 4], strides = [1, 1, 1]} : vector<10x10x4xbf16> to vector<8x8x4xbf16>
    %11 = vector.shape_cast %10 : vector<8x8x4xbf16> to vector<64x4xbf16>
    %12 = vector.extract_strided_slice %1 {offsets = [1, 2, 0], sizes = [8, 8, 4], strides = [1, 1, 1]} : vector<10x10x4xbf16> to vector<8x8x4xbf16>
    %13 = vector.shape_cast %12 : vector<8x8x4xbf16> to vector<64x4xbf16>
    %14 = vector.extract_strided_slice %1 {offsets = [2, 0, 0], sizes = [8, 8, 4], strides = [1, 1, 1]} : vector<10x10x4xbf16> to vector<8x8x4xbf16>
    %15 = vector.shape_cast %14 : vector<8x8x4xbf16> to vector<64x4xbf16>
    %16 = vector.extract_strided_slice %1 {offsets = [2, 1, 0], sizes = [8, 8, 4], strides = [1, 1, 1]} : vector<10x10x4xbf16> to vector<8x8x4xbf16>
    %17 = vector.shape_cast %16 : vector<8x8x4xbf16> to vector<64x4xbf16>
    %18 = vector.extract_strided_slice %1 {offsets = [2, 2, 0], sizes = [8, 8, 4], strides = [1, 1, 1]} : vector<10x10x4xbf16> to vector<8x8x4xbf16>
    %19 = vector.shape_cast %18 : vector<8x8x4xbf16> to vector<64x4xbf16>
    %20 = tpu.concatenate %3, %5, %7, %9, %11, %13, %15, %17, %19 in 1 : vector<64x4xbf16>, vector<64x4xbf16>, vector<64x4xbf16>, vector<64x4xbf16>, vector<64x4xbf16>, vector<64x4xbf16>, vector<64x4xbf16>, vector<64x4xbf16>, vector<64x4xbf16> -> vector<64x36xbf16>
    %c0_4 = arith.constant 0 : index
    %c0_5 = arith.constant 0 : index
    %21 = vector.load %arg4[%c0_4, %c0_5] : memref<36x128xbf16, #tpu.memory_space<vmem>>, vector<36x128xbf16>
    %cst = arith.constant dense<0.000000e+00> : vector<64x128xf32>
    %22 = tpu.matmul %20, %21, %cst {dimension_numbers = #tpu.dot_dimension_numbers<[1], [0], [0], [1], [0, 0, 1, 1], [], []>} : vector<64x36xbf16>, vector<36x128xbf16>, vector<64x128xf32> -> vector<64x128xf32>
    %c0_6 = arith.constant 0 : index
    %c0_7 = arith.constant 0 : index
    %23 = vector.load %arg5[%c0_6, %c0_7] : memref<1x128xf32, #tpu.memory_space<vmem>>, vector<1x128xf32>
    %24 = vector.broadcast %23 : vector<1x128xf32> to vector<64x128xf32>
    %25 = arith.mulf %22, %24 : vector<64x128xf32>
    %c0_8 = arith.constant 0 : index
    %c0_9 = arith.constant 0 : index
    %26 = vector.load %arg6[%c0_8, %c0_9] : memref<1x128xf32, #tpu.memory_space<vmem>>, vector<1x128xf32>
    %27 = vector.broadcast %26 : vector<1x128xf32> to vector<64x128xf32>
    %28 = arith.addf %25, %27 : vector<64x128xf32>
    %cst_10 = arith.constant 0.000000e+00 : f32
    %29 = vector.broadcast %cst_10 : f32 to vector<64x128xf32>
    %30 = arith.maximumf %28, %29 : vector<64x128xf32>
    %31 = vector.shape_cast %30 : vector<64x128xf32> to vector<8x8x128xf32>
    %32 = arith.truncf %31 : vector<8x8x128xf32> to vector<8x8x128xbf16>
    %c0_11 = arith.constant 0 : index
    %c0_12 = arith.constant 0 : index
    %c0_13 = arith.constant 0 : index
    %c0_14 = arith.constant 0 : index
    %33 = vector.load %arg7[%c0_11, %c0_12, %c0_13, %c0_14] : memref<1x8x8x128xbf16, #tpu.memory_space<vmem>>, vector<1x8x8x128xbf16>
    %34 = vector.shape_cast %33 : vector<1x8x8x128xbf16> to vector<8x8x128xbf16>
    %35 = vector.shape_cast %32 : vector<8x8x128xbf16> to vector<1x8x8x128xbf16>
    tpu.vector_store %arg7[%c0_11, %c0_12, %c0_13, %c0_14], %35 {strides = array<i32>} : memref<1x8x8x128xbf16, #tpu.memory_space<vmem>>, vector<1x8x8x128xbf16>,
    return
  }
  func.func @transform_0(%arg0: i32, %arg1: i32, %arg2: i32) -> (i32, i32, i32, i32, i32) {
    %c0_i32 = arith.constant 0 : i32
    %c0_i32_0 = arith.constant 0 : i32
    %c0_i32_1 = arith.constant 0 : i32
    %c0_i32_2 = arith.constant 0 : i32
    return %arg0, %arg1, %c0_i32, %c0_i32_0, %c0_i32_1 : i32, i32, i32, i32, i32
  }
  func.func @transform_1(%arg0: i32, %arg1: i32, %arg2: i32) -> (i32, i32) {
    %c0_i32 = arith.constant 0 : i32
    %c0_i32_0 = arith.constant 0 : i32
    return %c0_i32, %arg2 : i32, i32
  }
  func.func @transform_2(%arg0: i32, %arg1: i32, %arg2: i32) -> (i32, i32) {
    %c0_i32 = arith.constant 0 : i32
    %c0_i32_0 = arith.constant 0 : i32
    return %c0_i32, %arg2 : i32, i32
  }
  func.func @transform_3(%arg0: i32, %arg1: i32, %arg2: i32) -> (i32, i32) {
    %c0_i32 = arith.constant 0 : i32
    %c0_i32_0 = arith.constant 0 : i32
    return %c0_i32, %arg2 : i32, i32
  }
  func.func @transform_4(%arg0: i32, %arg1: i32, %arg2: i32) -> (i32, i32, i32, i32) {
    %c0_i32 = arith.constant 0 : i32
    %c0_i32_0 = arith.constant 0 : i32
    return %arg0, %arg1, %c0_i32, %arg2 : i32, i32, i32, i32
  }
}

module attributes {stable_mosaic.version = 11 : i64} {
  func.func @_conv3x3_kernel(%arg0: i32, %arg1: i32, %arg2: i32, %arg3: memref<1x1x10x10x128xbf16, #tpu.memory_space<vmem>>, %arg4: memref<1152x128xbf16, #tpu.memory_space<vmem>>, %arg5: memref<1x128xf32, #tpu.memory_space<vmem>>, %arg6: memref<1x128xf32, #tpu.memory_space<vmem>>, %arg7: memref<1x8x8x128xf32, #tpu.memory_space<vmem>>) attributes {dimension_semantics = [#tpu.dimension_semantics<parallel>, #tpu.dimension_semantics<parallel>, #tpu.dimension_semantics<parallel>], iteration_bounds = array<i64: 2, 1, 1>, scalar_prefetch = 0 : i64, scratch_operands = 0 : i64, tpu.core_type = #tpu.core_type<tc>, window_params = [{transform_indices = @transform_0, window_bounds = array<i64: 1, 1, 10, 10, 128>}, {transform_indices = @transform_1, window_bounds = array<i64: 1152, 128>}, {transform_indices = @transform_2, window_bounds = array<i64: 1, 128>}, {transform_indices = @transform_3, window_bounds = array<i64: 1, 128>}, {transform_indices = @transform_4, window_bounds = array<i64: 1, 8, 8, 128>}]} {
    %c0 = arith.constant 0 : index
    %c0_0 = arith.constant 0 : index
    %c0_1 = arith.constant 0 : index
    %c0_2 = arith.constant 0 : index
    %c0_3 = arith.constant 0 : index
    %0 = vector.load %arg3[%c0, %c0_0, %c0_1, %c0_2, %c0_3] : memref<1x1x10x10x128xbf16, #tpu.memory_space<vmem>>, vector<1x1x10x10x128xbf16>
    %1 = vector.shape_cast %0 : vector<1x1x10x10x128xbf16> to vector<10x10x128xbf16>
    %2 = vector.extract_strided_slice %1 {offsets = [0, 0, 0], sizes = [8, 8, 128], strides = [1, 1, 1]} : vector<10x10x128xbf16> to vector<8x8x128xbf16>
    %3 = vector.shape_cast %2 : vector<8x8x128xbf16> to vector<64x128xbf16>
    %4 = vector.extract_strided_slice %1 {offsets = [0, 1, 0], sizes = [8, 8, 128], strides = [1, 1, 1]} : vector<10x10x128xbf16> to vector<8x8x128xbf16>
    %5 = vector.shape_cast %4 : vector<8x8x128xbf16> to vector<64x128xbf16>
    %6 = vector.extract_strided_slice %1 {offsets = [0, 2, 0], sizes = [8, 8, 128], strides = [1, 1, 1]} : vector<10x10x128xbf16> to vector<8x8x128xbf16>
    %7 = vector.shape_cast %6 : vector<8x8x128xbf16> to vector<64x128xbf16>
    %8 = vector.extract_strided_slice %1 {offsets = [1, 0, 0], sizes = [8, 8, 128], strides = [1, 1, 1]} : vector<10x10x128xbf16> to vector<8x8x128xbf16>
    %9 = vector.shape_cast %8 : vector<8x8x128xbf16> to vector<64x128xbf16>
    %10 = vector.extract_strided_slice %1 {offsets = [1, 1, 0], sizes = [8, 8, 128], strides = [1, 1, 1]} : vector<10x10x128xbf16> to vector<8x8x128xbf16>
    %11 = vector.shape_cast %10 : vector<8x8x128xbf16> to vector<64x128xbf16>
    %12 = vector.extract_strided_slice %1 {offsets = [1, 2, 0], sizes = [8, 8, 128], strides = [1, 1, 1]} : vector<10x10x128xbf16> to vector<8x8x128xbf16>
    %13 = vector.shape_cast %12 : vector<8x8x128xbf16> to vector<64x128xbf16>
    %14 = vector.extract_strided_slice %1 {offsets = [2, 0, 0], sizes = [8, 8, 128], strides = [1, 1, 1]} : vector<10x10x128xbf16> to vector<8x8x128xbf16>
    %15 = vector.shape_cast %14 : vector<8x8x128xbf16> to vector<64x128xbf16>
    %16 = vector.extract_strided_slice %1 {offsets = [2, 1, 0], sizes = [8, 8, 128], strides = [1, 1, 1]} : vector<10x10x128xbf16> to vector<8x8x128xbf16>
    %17 = vector.shape_cast %16 : vector<8x8x128xbf16> to vector<64x128xbf16>
    %18 = vector.extract_strided_slice %1 {offsets = [2, 2, 0], sizes = [8, 8, 128], strides = [1, 1, 1]} : vector<10x10x128xbf16> to vector<8x8x128xbf16>
    %19 = vector.shape_cast %18 : vector<8x8x128xbf16> to vector<64x128xbf16>
    %20 = tpu.concatenate %3, %5, %7, %9, %11, %13, %15, %17, %19 in 1 : vector<64x128xbf16>, vector<64x128xbf16>, vector<64x128xbf16>, vector<64x128xbf16>, vector<64x128xbf16>, vector<64x128xbf16>, vector<64x128xbf16>, vector<64x128xbf16>, vector<64x128xbf16> -> vector<64x1152xbf16>
    %c0_4 = arith.constant 0 : index
    %c0_5 = arith.constant 0 : index
    %21 = vector.load %arg4[%c0_4, %c0_5] : memref<1152x128xbf16, #tpu.memory_space<vmem>>, vector<1152x128xbf16>
    %cst = arith.constant dense<0.000000e+00> : vector<64x128xf32>
    %22 = tpu.matmul %20, %21, %cst {dimension_numbers = #tpu.dot_dimension_numbers<[1], [0], [0], [1], [0, 0, 1, 1], [], []>} : vector<64x1152xbf16>, vector<1152x128xbf16>, vector<64x128xf32> -> vector<64x128xf32>
    %c0_6 = arith.constant 0 : index
    %c0_7 = arith.constant 0 : index
    %23 = vector.load %arg5[%c0_6, %c0_7] : memref<1x128xf32, #tpu.memory_space<vmem>>, vector<1x128xf32>
    %24 = vector.broadcast %23 : vector<1x128xf32> to vector<64x128xf32>
    %25 = arith.mulf %22, %24 : vector<64x128xf32>
    %c0_8 = arith.constant 0 : index
    %c0_9 = arith.constant 0 : index
    %26 = vector.load %arg6[%c0_8, %c0_9] : memref<1x128xf32, #tpu.memory_space<vmem>>, vector<1x128xf32>
    %27 = vector.broadcast %26 : vector<1x128xf32> to vector<64x128xf32>
    %28 = arith.addf %25, %27 : vector<64x128xf32>
    %cst_10 = arith.constant 0.000000e+00 : f32
    %29 = vector.broadcast %cst_10 : f32 to vector<64x128xf32>
    %30 = arith.maximumf %28, %29 : vector<64x128xf32>
    %31 = vector.shape_cast %30 : vector<64x128xf32> to vector<8x8x128xf32>
    %c0_11 = arith.constant 0 : index
    %c0_12 = arith.constant 0 : index
    %c0_13 = arith.constant 0 : index
    %c0_14 = arith.constant 0 : index
    %32 = vector.load %arg7[%c0_11, %c0_12, %c0_13, %c0_14] : memref<1x8x8x128xf32, #tpu.memory_space<vmem>>, vector<1x8x8x128xf32>
    %33 = vector.shape_cast %32 : vector<1x8x8x128xf32> to vector<8x8x128xf32>
    %34 = vector.shape_cast %31 : vector<8x8x128xf32> to vector<1x8x8x128xf32>
    tpu.vector_store %arg7[%c0_11, %c0_12, %c0_13, %c0_14], %34 {strides = array<i32>} : memref<1x8x8x128xf32, #tpu.memory_space<vmem>>, vector<1x8x8x128xf32>,
    return
  }
  func.func @transform_0(%arg0: i32, %arg1: i32, %arg2: i32) -> (i32, i32, i32, i32, i32) {
    %c0_i32 = arith.constant 0 : i32
    %c0_i32_0 = arith.constant 0 : i32
    %c0_i32_1 = arith.constant 0 : i32
    %c0_i32_2 = arith.constant 0 : i32
    return %arg0, %arg1, %c0_i32, %c0_i32_0, %c0_i32_1 : i32, i32, i32, i32, i32
  }
  func.func @transform_1(%arg0: i32, %arg1: i32, %arg2: i32) -> (i32, i32) {
    %c0_i32 = arith.constant 0 : i32
    %c0_i32_0 = arith.constant 0 : i32
    return %c0_i32, %arg2 : i32, i32
  }
  func.func @transform_2(%arg0: i32, %arg1: i32, %arg2: i32) -> (i32, i32) {
    %c0_i32 = arith.constant 0 : i32
    %c0_i32_0 = arith.constant 0 : i32
    return %c0_i32, %arg2 : i32, i32
  }
  func.func @transform_3(%arg0: i32, %arg1: i32, %arg2: i32) -> (i32, i32) {
    %c0_i32 = arith.constant 0 : i32
    %c0_i32_0 = arith.constant 0 : i32
    return %c0_i32, %arg2 : i32, i32
  }
  func.func @transform_4(%arg0: i32, %arg1: i32, %arg2: i32) -> (i32, i32, i32, i32) {
    %c0_i32 = arith.constant 0 : i32
    %c0_i32_0 = arith.constant 0 : i32
    return %arg0, %arg1, %c0_i32, %arg2 : i32, i32, i32, i32
  }
}

</mosaic_0001>

<bundles_post_ra>
// kernel: down_forward.3
= control target key start
LH: loop header
LB: loop body
LE: loop exit
PB: predicated region body
PF: predicated region fallthrough
CT: control target
= control target key end

     0   :  { %s389_s6 = smov 0   ;;  %s391_s7 = smov 0   ;;  %s434_s0 = inlined_call_operand.vmem [shape: bf16[2,16,8,8], index: 0, kind: input, shape index: {}]   ;;  %s435_s1 = inlined_call_operand.vmem [shape: bf16[2,8,8,4], index: 1, kind: output, shape index: {}]  }
   0x1   :  { %s393_s8 = smov 0  }
   0x2 LB: > { %s23_s9 = sadd.s32 1, %s372_s7  ;;  %p320_p0 = scmp.ge.s32.totalorder %s376_s8, 1  ;;  %s376_s8 = sphi %s393_s8, %s11_s8   ;;  %s372_s7 = sphi %s391_s7, %s437_s7   ;;  %s368_s6 = sphi %s389_s6, %s436_s6  }
   0x3   : > { %p25_p1 = scmp.ge.s32.totalorder %s23_s9, 2  ;;  %p108_p2 = scmp.lt.s32.totalorder %s376_s8, 3 }
   0x5   : > { %s439_s9 = smov (%p25_p1, %s23_s9), 0  ;;  %p109_p3 = pnand %p320_p0, %p108_p2 }
   0x6   : > { %p137_p4 = scmp.lt.s32.totalorder (!%p109_p3), %s368_s6, 1  ;;  %s378_s14 = smov (!%p109_p3), 124   ;;  %vm220_vm0 = vcmask (!%p109_p3), 27648  }
   0x7   : > { %112 = sbr.rel (%p109_p3) target bundleno = 151 (0x97), region = 24 }
   0xe   : > { %s441_s6 = smov (!%p137_p4, %s368_s6), 1 }
   0xf   : > { %s327_s10 = sshll.u32 %s441_s6, 6  ;;  %s328_s15 = sshll.u32 %s441_s6, 5 }
  0x10   : > { %s144_s13 = scalar_lea.vmem %s434_s0, %s327_s10  ;;  %s154_s18 = scalar_lea.vmem %s435_s1, %s328_s15 }
  0x11   : > { %v160_v0 = vld [vmem:[%s144_s13 + $0x10] sm:$0xf]  ;;  %v161_v1 = vld [vmem:[%s144_s13 + $0x14] sm:$0xf]  ;;  %v156_v2 = vld [vmem:[%s144_s13] sm:$0xf] }
  0x12   : > { %v174_v3 = vmax.bf16 %v161_v1, %v160_v0  ;;  %v157_v4 = vld [vmem:[%s144_s13 + $0x4] sm:$0xf]  ;;  %v162_v5 = vld [vmem:[%s144_s13 + $0x18] sm:$0xf]  ;;  %v163_v6 = vld [vmem:[%s144_s13 + $0x1c] sm:$0xf] }
  0x13   : > { %v172_v7 = vmax.bf16 %v157_v4, %v156_v2  ;;  %v158_v8 = vld [vmem:[%s144_s13 + $0x8] sm:$0xf]  ;;  %v159_v9 = vld [vmem:[%s144_s13 + $0xc] sm:$0xf]  ;;  %v175_v10 = vmax.bf16 %v163_v6, %v162_v5  ;;  %v164_v14 = vld [vmem:[%s144_s13 + $0x20] sm:$0xf] }
  0x14   : > { %192 = vrot.lane.b32.xlu1 %v174_v3, %s378_s14  ;;  %v173_v11 = vmax.bf16 %v159_v9, %v158_v8  ;;  %v166_v12 = vld [vmem:[%s144_s13 + $0x28] sm:$0xf]  ;;  %v167_v13 = vld [vmem:[%s144_s13 + $0x2c] sm:$0xf]  ;;  %v165_v15 = vld [vmem:[%s144_s13 + $0x24] sm:$0xf] }
  0x15   : > { %188 = vrot.lane.b32.xlu0 %v172_v7, %s378_s14  ;;  %v177_v16 = vmax.bf16 %v167_v13, %v166_v12  ;;  %v176_v17 = vmax.bf16 %v165_v15, %v164_v14  ;;  %v170_v18 = vld [vmem:[%s144_s13 + $0x38] sm:$0xf]  ;;  %v171_v19 = vld [vmem:[%s144_s13 + $0x3c] sm:$0xf]  ;;  %v168_v20 = vld [vmem:[%s144_s13 + $0x30] sm:$0xf] }
  0x16   : > { %v169_v21 = vld [vmem:[%s144_s13 + $0x34] sm:$0xf]  ;;  %v179_v22 = vmax.bf16 %v171_v19, %v170_v18 }
  0x17   : > { %v178_v23 = vmax.bf16 %v169_v21, %v168_v20 }
  0x18   : > { %194 = vrot.lane.b32.xlu1 %v175_v10, %s378_s14 }
  0x19   : > { %190 = vrot.lane.b32.xlu0 %v173_v11, %s378_s14 }
  0x1c   : > { %198 = vrot.lane.b32.xlu1 %v177_v16, %s378_s14 }
  0x1d   : > { %196 = vrot.lane.b32.xlu0 %v176_v17, %s378_s14 }
  0x20   : > { %202 = vrot.lane.b32.xlu1 %v179_v22, %s378_s14 }
  0x21   : > { %200 = vrot.lane.b32.xlu0 %v178_v23, %s378_s14 }
  0x86   : > { %v193_v24 = vpop.permute.xlu1 %192 }
  0x87   : > { %v214_v25 = vmax.bf16 %v193_v24, %v174_v3  ;;  %v189_v26 = vpop.permute.xlu0 %188 }
  0x88   : > { %v212_v27 = vmax.bf16 %v189_v26, %v172_v7 }
  0x89   : > { %223 = vst.msk [vmem:[%s154_s18 + $0x8] sm:$0xf] %vm220_vm0, %v214_v25 }
  0x8a   : > { %221 = vst.msk [vmem:[%s154_s18] sm:$0xf] %vm220_vm0, %v212_v27  ;;  %v195_v28 = vpop.permute.xlu1 %194 }
  0x8b   : > { %v215_v29 = vmax.bf16 %v195_v28, %v175_v10  ;;  %v191_v30 = vpop.permute.xlu0 %190 }
  0x8c   : > { %v213_v31 = vmax.bf16 %v191_v30, %v173_v11 }
  0x8d   : > { %224 = vst.msk [vmem:[%s154_s18 + $0xc] sm:$0xf] %vm220_vm0, %v215_v29 }
  0x8e   : > { %222 = vst.msk [vmem:[%s154_s18 + $0x4] sm:$0xf] %vm220_vm0, %v213_v31  ;;  %v199_v32 = vpop.permute.xlu1 %198 }
  0x8f   : > { %v217_v33 = vmax.bf16 %v199_v32, %v177_v16  ;;  %v197_v34 = vpop.permute.xlu0 %196 }
  0x90   : > { %v216_v35 = vmax.bf16 %v197_v34, %v176_v17 }
  0x91   : > { %226 = vst.msk [vmem:[%s154_s18 + $0x14] sm:$0xf] %vm220_vm0, %v217_v33 }
  0x92   : > { %225 = vst.msk [vmem:[%s154_s18 + $0x10] sm:$0xf] %vm220_vm0, %v216_v35  ;;  %v203_v36 = vpop.permute.xlu1 %202 }
  0x93   : > { %v219_v37 = vmax.bf16 %v203_v36, %v179_v22  ;;  %v201_v38 = vpop.permute.xlu0 %200 }
  0x94   : > { %v218_v39 = vmax.bf16 %v201_v38, %v178_v23 }
  0x95   : > { %228 = vst.msk [vmem:[%s154_s18 + $0x1c] sm:$0xf] %vm220_vm0, %v219_v37 }
  0x96   : > { %227 = vst.msk [vmem:[%s154_s18 + $0x18] sm:$0xf] %vm220_vm0, %v218_v39 }
  0x97 PF: > { %s11_s8 = sadd.s32 1, %s376_s8   ;;  %s436_s6 = smov %s372_s7 }
  0x98   : > { %p8_p5 = scmp.ge.s32.totalorder %s11_s8, 4   ;;  %s437_s7 = smov %s439_s9 }
  0x9a   :  { %10 = sbr.rel (!%p8_p5) target bundleno = 2 (0x2), region = 54 }

// kernel: down_forward.4
= control target key start
LH: loop header
LB: loop body
LE: loop exit
PB: predicated region body
PF: predicated region fallthrough
CT: control target
= control target key end

     0   :  { %s1227_s15 = smov 0   ;;  %s1229_s16 = smov 0   ;;  %s1552_s0 = inlined_call_operand.vmem [shape: bf16[2,1,10,10,4], index: 0, kind: input, shape index: {}]   ;;  %s1553_s1 = inlined_call_operand.vmem [shape: bf16[36,128], index: 1, kind: input, shape index: {}]   ;;  %s1554_s2 = inlined_call_operand.vmem [shape: f32[1,128], index: 2, kind: input, shape index: {}]   ;;  %s1555_s3 = inlined_call_operand.vmem [shape: f32[1,128], index: 3, kind: input, shape index: {}]   ;;  %s1556_s4 = inlined_call_operand.vmem [shape: bf16[2,8,8,128], index: 4, kind: output, shape index: {}]  }
   0x1   :  { %s1231_s17 = smov 0  }
   0x2 LB: > { %s33_s18 = sadd.s32 1, %s1188_s16  ;;  %p1020_p0 = scmp.ge.s32.totalorder %s1192_s17, 1  ;;  %s1192_s17 = sphi %s1231_s17, %s14_s17   ;;  %s1188_s16 = sphi %s1229_s16, %s1562_s16   ;;  %s1184_s15 = sphi %s1227_s15, %s1561_s15  }
   0x3   : > { %p35_p1 = scmp.ge.s32.totalorder %s33_s18, 2  ;;  %p216_p2 = scmp.lt.s32.totalorder %s1192_s17, 3 }
   0x5   : > { %s1564_s18 = smov (%p35_p1, %s33_s18), 0  ;;  %p217_p3 = pnand %p1020_p0, %p216_p2 }
   0x6   : > { %p263_p4 = scmp.lt.s32.totalorder (!%p217_p3), %s1184_s15, 1  ;;  %vm447_vm0 = vcmask (!%p217_p3), 1042432   ;;  %vm448_vm1 = vcmask (!%p217_p3), 1046532   ;;  %s1194_s23 = smov (!%p217_p3), 12   ;;  %vm316_vm3 = vsmask.f32 (!%p217_p3), 3328 }
   0x7   : > { %220 = sbr.rel (%p217_p3) target bundleno = 438 (0x1b6), region = 36  ;;  %vm1253_vm2 = vmor (!%p217_p3), %vm447_vm0, %vm448_vm1  ;;  %vm317_vm4 = vsmask.f32 (!%p217_p3), 7440  ;;  %s1195_s24 = smov (!%p217_p3), 8   ;;  %vm748_vm6 = vcmask (!%p217_p3), 1041408   ;;  %vm643_vm7 = vcmask (!%p217_p3), 31744  }
   0x8   : > { %vm1376_vm5 = vmor (!%p217_p3), %vm316_vm3, %vm317_vm4  ;;  %s1196_s25 = smov (!%p217_p3), 4   ;;  %s1197_s26 = smov (!%p217_p3), 16   ;;  %vm656_vm8 = vcmask (!%p217_p3), 64512   ;;  %vm674_vm9 = vcmask (!%p217_p3), 130048   ;;  %vm665_vm10 = vcmask (!%p217_p3), 97280   ;;  %vm683_vm11 = vcmask (!%p217_p3), 162816  }
   0x9   : > { %s1198_s27 = smov (!%p217_p3), 20   ;;  %s1199_s30 = smov (!%p217_p3), 24   ;;  %vm692_vm12 = vcmask (!%p217_p3), 195584   ;;  %vm701_vm13 = vcmask (!%p217_p3), 228352   ;;  %vm710_vm14 = vcmask (!%p217_p3), 261120   ;;  %vm739_vm15 = vcmask (!%p217_p3), 293888  }
   0xa   : > { %s1200_s9 = smov (!%p217_p3), 28   ;;  %s1201_s10 = smov (!%p217_p3), 32  }
   0xe   : > { %s1566_s15 = smov (!%p263_p4, %s1184_s15), 1 }
   0xf   : > { %s1125_s19 = smul.u32 80, %s1566_s15 }
  0x11   : > { %s1251_s22 = scalar_lea.vmem %s1552_s0, %s1125_s19  ;;  %s1072_s19 = sshll.u32 %s1566_s15, 5 }
  0x12   : > { %v1258_v1 = vld [vmem:[%s1251_s22 + $0x28] sm:$0xf]  ;;  %v1261_v2 = vld [vmem:[%s1251_s22 + $0x30] sm:$0xf]  ;;  %v1272_v6 = vld [vmem:[%s1251_s22 + $0x20] sm:$0xf] }
  0x13   : > { %v1264_v3 = vld [vmem:[%s1251_s22 + $0x8] sm:$0xf]  ;;  %v1048_v4 = vcombine.low %v1258_v1, %v1261_v2  ;;  %v1269_v5 = vld [vmem:[%s1251_s22 + $0x10] sm:$0xf]  ;;  %v1275_v7 = vld [vmem:[%s1251_s22 + $0x24] sm:$0x1] }
  0x14   : > { %v1046_v8 = vcombine.low %v1264_v3, %v1269_v5  ;;  %v1280_v9 = vld [vmem:[%s1251_s22 + $0x2c] sm:$0x1]  ;;  %v1028_v10 = vrot.slane %v1272_v6, 9  ;;  %v468_v11 = vrot.slane %v1275_v7, 5  ;;  %v1029_v12 = vrot.slane %v1258_v1, 9 }
  0x15   : > { %583 = vrot.lane.b32.xlu1 %v1048_v4, %s1194_s23  ;;  %v472_v13 = vrot.slane %v1280_v9, 5  ;;  %v1288_v14 = vld [vmem:[%s1251_s22] sm:$0xf]  ;;  %v1291_v15 = vld [vmem:[%s1251_s22 + $0x4] sm:$0x1]  ;;  %v1025_v16 = vrot.slane %v1264_v3, 9 }
  0x16   : > { %579 = vrot.lane.b32.xlu0 %v1046_v8, %s1194_s23  ;;  %v1297_v17 = vsel %vm1253_vm2, %v1028_v10, %v468_v11  ;;  %v1300_v18 = vld [vmem:[%s1251_s22 + $0xc] sm:$0x1]  ;;  %v1024_v19 = vrot.slane %v1288_v14, 9  ;;  %v452_v20 = vrot.slane %v1291_v15, 5  ;;  %v1305_v21 = vld [vmem:[%s1251_s22 + $0x34] sm:$0x1] }
  0x17   : > { %v1309_v22 = vsel %vm1253_vm2, %v1029_v12, %v472_v13  ;;  %v456_v23 = vrot.slane %v1300_v18, 5  ;;  %v1313_v24 = vld [vmem:[%s1251_s22 + $0x38] sm:$0xf]  ;;  %v1316_v25 = vld [vmem:[%s1251_s22 + $0x3c] sm:$0x1]  ;;  %v1030_v26 = vrot.slane %v1261_v2, 9 }
  0x18   : > { %v1321_v27 = vcombine.low %v1297_v17, %v1309_v22  ;;  %v453_v28 = vsel %vm1253_vm2, %v1024_v19, %v452_v20  ;;  %v476_v29 = vrot.slane %v1305_v21, 5  ;;  %v1031_v30 = vrot.slane %v1313_v24, 9  ;;  %v301_v31 = vld [vmem:[%s1251_s22 + $0x14] sm:$0x1]  ;;  %v1329_v32 = vld [vmem:[%s1251_s22 + $0x18] sm:$0xf] }
  0x19   : > { %v1333_v33 = vsel %vm1253_vm2, %v1025_v16, %v456_v23  ;;  %v480_v34 = vrot.slane %v1316_v25, 5  ;;  %v303_v35 = vld [vmem:[%s1251_s22 + $0x1c] sm:$0x1]  ;;  %v1026_v36 = vrot.slane %v1269_v5, 9  ;;  %v460_v37 = vrot.slane %v301_v31, 5 }
  0x1a   : > { %570 = vrot.lane.b32.xlu1 %v1321_v27, %s1195_s24  ;;  %v1042_v38 = vcombine.low %v453_v28, %v1333_v33  ;;  %v1342_v39 = vsel %vm1253_vm2, %v1030_v26, %v476_v29  ;;  %v1027_v40 = vrot.slane %v1329_v32, 9  ;;  %v464_v41 = vrot.slane %v303_v35, 5 }
  0x1b   : > { %v1347_v42 = vsel %vm1253_vm2, %v1031_v30, %v480_v34  ;;  %v1351_v43 = vsel %vm1253_vm2, %v1026_v36, %v460_v37  ;;  %v348_v44 = vshrl.u32 %v1269_v5, 16  ;;  %v351_v45 = vshll.u32 %v1269_v5, 16 }
  0x1c   : > { %566 = vrot.lane.b32.xlu0 %v1042_v38, %s1195_s24  ;;  %v1357_v46 = vcombine.low %v1342_v39, %v1347_v42  ;;  %v1361_v47 = vsel %vm1253_vm2, %v1027_v40, %v464_v41  ;;  %v357_v48 = vshll.u32 %v301_v31, 16  ;;  %v362_v49 = vshrl.u32 %v1329_v32, 16 }
  0x1d   : > { %v1366_v50 = vcombine.low %v1351_v43, %v1361_v47  ;;  %v350_v51 = vrot.slane %v348_v44, 4  ;;  %v353_v52 = vrot.slane %v351_v45, 5  ;;  %v365_v53 = vshll.u32 %v1329_v32, 16 }
  0x1e   : > { %572 = vrot.lane.b32.xlu1 %v1357_v46, %s1195_s24  ;;  %v359_v54 = vrot.slane %v357_v48, 5  ;;  %v364_v55 = vrot.slane %v362_v49, 4  ;;  %v371_v56 = vshll.u32 %v303_v35, 16  ;;  %v320_v57 = vshrl.u32 %v1288_v14, 16 }
  0x1f   : > { %v354_v58 = vor.u32 %v353_v52, %v350_v51  ;;  %v367_v59 = vrot.slane %v365_v53, 5  ;;  %v323_v60 = vshll.u32 %v1288_v14, 16  ;;  %v329_v61 = vshll.u32 %v1291_v15, 16 }
  0x20   : > { %568 = vrot.lane.b32.xlu0 %v1366_v50, %s1195_s24  ;;  %v373_v63 = vrot.slane %v371_v56, 5  ;;  %v322_v4 = vrot.slane %v320_v57, 4  ;;  %v334_v8 = vshrl.u32 %v1264_v3, 16  ;;  %v337_v10 = vshll.u32 %v1264_v3, 16 }
  0x21   : > { %v355_v11 = vrot.slane %v354_v58, 4  ;;  %v368_v12 = vor.u32 %v367_v59, %v364_v55  ;;  %v325_v13 = vrot.slane %v323_v60, 5  ;;  %v331_v16 = vrot.slane %v329_v61, 5 }
  0x22   : > { %v336_v19 = vrot.slane %v334_v8, 4  ;;  %v339_v15 = vrot.slane %v337_v10, 5  ;;  %v343_v20 = vshll.u32 %v1300_v18, 16  ;;  %v404_v23 = vshrl.u32 %v1261_v2, 16 }
  0x23   : > { %v1386_v26 = vsel %vm1376_vm5, %v355_v11, %v359_v54  ;;  %v369_v28 = vrot.slane %v368_v12, 4  ;;  %v326_v29 = vor.u32 %v325_v13, %v322_v4  ;;  %v407_v30 = vshll.u32 %v1261_v2, 16  ;;  %v1415_v11 = vld [vmem:[%s1251_s22 + $0x40] sm:$0xf] }
  0x24   : > { %v340_v31 = vor.u32 %v339_v15, %v336_v19  ;;  %v345_v34 = vrot.slane %v343_v20, 5  ;;  %v406_v35 = vrot.slane %v404_v23, 4  ;;  %v413_v36 = vshll.u32 %v1305_v21, 16 }
  0x25   : > { %v1392_v37 = vsel %vm1376_vm5, %v369_v28, %v373_v63  ;;  %v327_v18 = vrot.slane %v326_v29, 4  ;;  %v409_v38 = vrot.slane %v407_v30, 5  ;;  %v418_v40 = vshrl.u32 %v1313_v24, 16 }
  0x26   : > { %v1397_v41 = vcombine.low %v1386_v26, %v1392_v37  ;;  %v341_v44 = vrot.slane %v340_v31, 4  ;;  %v415_v45 = vrot.slane %v413_v36, 5  ;;  %v421_v48 = vshll.u32 %v1313_v24, 16 }
  0x27   : > { %v332_v49 = vsel %vm1376_vm5, %v327_v18, %v331_v16  ;;  %v410_v21 = vor.u32 %v409_v38, %v406_v35  ;;  %v420_v51 = vrot.slane %v418_v40, 4  ;;  %v427_v52 = vshll.u32 %v1316_v25, 16 }
  0x28   : > { %548 = vrot.lane.b32.xlu1 %v1397_v41, %s1196_s25  ;;  %v346_v53 = vsel %vm1376_vm5, %v341_v44, %v345_v34  ;;  %v423_v54 = vrot.slane %v421_v48, 5  ;;  %v376_v55 = vshrl.u32 %v1272_v6, 16  ;;  %v379_v56 = vshll.u32 %v1272_v6, 16 }
  0x29   : > { %v1038_v57 = vcombine.low %v332_v49, %v346_v53  ;;  %v411_v58 = vrot.slane %v410_v21, 4  ;;  %v429_v59 = vrot.slane %v427_v52, 5  ;;  %v385_v60 = vshll.u32 %v1275_v7, 16  ;;  %v313_v7 = vld [vmem:[%s1251_s22 + $0x44] sm:$0x1] }
  0x2a   : > { %v424_v25 = vor.u32 %v423_v54, %v420_v51  ;;  %v378_v61 = vrot.slane %v376_v55, 4  ;;  %v381_v63 = vrot.slane %v379_v56, 5  ;;  %v390_v4 = vshrl.u32 %v1258_v1, 16 }
  0x2b   : > { %546 = vrot.lane.b32.xlu0 %v1038_v57, %s1196_s25  ;;  %v393_v8 = vshll.u32 %v1258_v1, 16  ;;  %v399_v10 = vshll.u32 %v1280_v9, 16  ;;  %v416_v12 = vsel %vm1376_vm5, %v411_v58, %v415_v45  ;;  %v387_v15 = vrot.slane %v385_v60, 5 }
  0x2c   : > { %v425_v13 = vrot.slane %v424_v25, 4  ;;  %v382_v16 = vor.u32 %v381_v63, %v378_v61  ;;  %v392_v19 = vrot.slane %v390_v4, 4  ;;  %v483_v29 = vshrl.u32 %v1415_v11, 16  ;;  %v314_v25 = vld [vmem:[%s1251_s22 + $0x48] sm:$0xf] }
  0x2d   : > { %v395_v20 = vrot.slane %v393_v8, 5  ;;  %v486_v30 = vshll.u32 %v1415_v11, 16  ;;  %v401_v34 = vrot.slane %v399_v10, 5  ;;  %v492_v35 = vshll.u32 %v313_v7, 16 }
  0x2e   : > { %v430_v23 = vsel %vm1376_vm5, %v425_v13, %v429_v59  ;;  %v383_v28 = vrot.slane %v382_v16, 4  ;;  %v485_v36 = vrot.slane %v483_v29, 4  ;;  %v1049_v44 = vcombine.low %v1313_v24, %v1415_v11  ;;  %v315_v16 = vld [vmem:[%s1251_s22 + $0x4c] sm:$0x1]  ;;  %s293_s22 = scalar_lea.vmem %s1556_s4, %s1072_s19 }
  0x2f   : > { %v1424_v9 = vcombine.low %v416_v12, %v430_v23  ;;  %v396_v31 = vor.u32 %v395_v20, %v392_v19  ;;  %v488_v18 = vrot.slane %v486_v30, 5  ;;  %v494_v48 = vrot.slane %v492_v35, 5 }
  0x30   : > { %v388_v38 = vsel %vm1376_vm5, %v383_v28, %v387_v15  ;;  %v1047_v54 = vcombine.low %v1329_v32, %v1272_v6  ;;  %v1034_v56 = vcombine.low %v1288_v14, %v1264_v3  ;;  %v1050_v58 = vcombine.low %v346_v53, %v1386_v26 }
  0x31   : > { %552 = vrot.lane.b32.xlu1 %v1424_v9, %s1196_s25  ;;  %v397_v40 = vrot.slane %v396_v31, 4  ;;  %v489_v45 = vor.u32 %v488_v18, %v485_v36  ;;  %v1032_v59 = vrot.slane %v1415_v11, 9  ;;  %v500_v60 = vrot.slane %v313_v7, 5 }
  0x32   : > { %v1056_v61 = vcombine.low %v1309_v22, %v1342_v39  ;;  %v1051_v63 = vcombine.low %v1392_v37, %v388_v38  ;;  %v503_v8 = vshrl.u32 %v314_v25, 16  ;;  %v506_v10 = vshll.u32 %v314_v25, 16 }
  0x33   : > { %v402_v49 = vsel %vm1376_vm5, %v397_v40, %v401_v34  ;;  %v490_v51 = vrot.slane %v489_v45, 4  ;;  %v501_v4 = vsel %vm1253_vm2, %v1032_v59, %v500_v60  ;;  %v1054_v53 = vcombine.low %v1333_v33, %v1351_v43 }
  0x34   : > { %v1434_v21 = vcombine.low %v388_v38, %v402_v49  ;;  %v1052_v52 = vcombine.low %v402_v49, %v416_v12  ;;  %v1057_v26 = vcombine.low %v1347_v42, %v501_v4  ;;  %v505_v12 = vrot.slane %v503_v8, 4  ;;  %v1167_v42 = vld [vmem:[%s1553_s1] sm:$0xff]  }
  0x35   : > { %585 = vrot.lane.b32.xlu1 %v1049_v44, %s1194_s23  ;;  %v495_v55 = vsel %vm1376_vm5, %v490_v51, %v494_v48  ;;  %v508_v13 = vrot.slane %v506_v10, 5  ;;  %v1460_v22 = vcombine.low %v1261_v2, %v1313_v24  ;;  %v1055_v39 = vcombine.low %v1361_v47, %v1297_v17  ;;  %1103 = vmatprep.subr.bf16.mxu0 %v1167_v42  ;;  %v1168_v17 = vld [vmem:[%s1553_s1 + $0x8] sm:$0xff]  }
  0x36   : > { %550 = vrot.lane.b32.xlu0 %v1434_v21, %s1196_s25  ;;  %v1053_v57 = vcombine.low %v430_v23, %v495_v55  ;;  %v512_v19 = vshll.u32 %v315_v16, 16  ;;  %v1058_v33 = vcombine.low %v1415_v11, %v314_v25  ;;  %v1471_v2 = vcombine.low %v1269_v5, %v1329_v32  ;;  %1117 = vmatprep.subr.bf16.mxu1 %v1167_v42  ;;  %v1169_v32 = vld [vmem:[%s1553_s1 + $0x10] ss:$0 sps:$4 sm:$0x33]  }
  0x37   : > { %v509_v37 = vor.u32 %v508_v13, %v505_v12  ;;  %1104 = vmatpush3.bf16.msra.mxu0 %v1167_v42  ;;  %1120 = vmatpush3.bf16.msra.mxu1 %v1167_v42  ;;  %v1036_v47 = vcombine.low %v1272_v6, %v1258_v1  ;;  %v1033_v7 = vrot.slane %v314_v25, 9  ;;  %v520_v15 = vrot.slane %v315_v16, 5 }
  0x38   : > { %v514_v43 = vrot.slane %v512_v19, 5  ;;  %1105 = vmatprep.subr.bf16.mxu0 %v1168_v17  ;;  %1118 = vmatprep.subr.bf16.mxu1 %v1168_v17  ;;  %v750_v1 = vsel %vm748_vm6, %v1169_v32, 0 }
  0x39   : > { %596 = vrot.lane.b32.xlu1 %v1052_v52, %s1197_s26  ;;  %v510_v24 = vrot.slane %v509_v37, 4  ;;  %v521_v6 = vsel %vm1253_vm2, %v1033_v7, %v520_v15 }
  0x3a   : > { %581 = vrot.lane.b32.xlu0 %v1047_v54, %s1194_s23  ;;  %v1060_v62 = vcombine.low %v501_v4, %v521_v6 }
  0x3b   : > { %v515_v5 = vsel %vm1376_vm5, %v510_v24, %v514_v43  ;;  %1106 = vmatpush3.bf16.msra.mxu0 %v1168_v17  ;;  %1121 = vmatpush3.bf16.msra.mxu1 %v1168_v17 }
  0x3c   : > { %v1059_v11 = vcombine.low %v495_v55, %v515_v5  ;;  %1123 = vmatprep.subr.msk.bf16.mxu0 %vm748_vm6, %v1169_v32  ;;  %1124 = vmatprep.subr.msk.bf16.mxu1 %vm748_vm6, %v1169_v32 }
  0x3d   : > { %598 = vrot.lane.b32.xlu1 %v1053_v57, %s1197_s26 }
  0x3e   : > { %592 = vrot.lane.b32.xlu0 %v1050_v58, %s1197_s26 }
  0x3f   : > { %1108 = vmatpush3.bf16.msra.mxu0 %v750_v1  ;;  %1122 = vmatpush3.bf16.msra.mxu1 %v750_v1 }
  0x41   : > { %609 = vrot.lane.b32.xlu1 %v1056_v61, %s1198_s27 }
  0x42   : > { %594 = vrot.lane.b32.xlu0 %v1051_v63, %s1197_s26 }
  0x45   : > { %611 = vrot.lane.b32.xlu1 %v1057_v26, %s1198_s27 }
  0x46   : > { %605 = vrot.lane.b32.xlu0 %v1054_v53, %s1198_s27 }
  0x49   : > { %619 = vrot.lane.b32.xlu1 %v1460_v22, %s1199_s30 }
  0x4a   : > { %607 = vrot.lane.b32.xlu0 %v1055_v39, %s1198_s27 }
  0x4d   : > { %621 = vrot.lane.b32.xlu1 %v1058_v33, %s1199_s30 }
  0x4e   : > { %615 = vrot.lane.b32.xlu0 %v1471_v2, %s1199_s30 }
  0x51   : > { %629 = vrot.lane.b32.xlu1 %v1424_v9, %s1200_s9 }
  0x52   : > { %617 = vrot.lane.b32.xlu0 %v1036_v47, %s1199_s30 }
  0x55   : > { %631 = vrot.lane.b32.xlu1 %v1059_v11, %s1200_s9 }
  0x56   : > { %625 = vrot.lane.b32.xlu0 %v1397_v41, %s1200_s9 }
  0x59   : > { %639 = vrot.lane.b32.xlu1 %v1357_v46, %s1201_s10 }
  0x5a   : > { %627 = vrot.lane.b32.xlu0 %v1434_v21, %s1200_s9 }
  0x5d   : > { %641 = vrot.lane.b32.xlu1 %v1060_v62, %s1201_s10 }
  0x5e   : > { %635 = vrot.lane.b32.xlu0 %v1366_v50, %s1201_s10 }
  0x62   : > { %637 = vrot.lane.b32.xlu0 %v1321_v27, %s1201_s10 }
  0x87   : > { %v584_v20 = vpop.permute.xlu1 %583 }
  0x88   : > { %v580_v23 = vpop.permute.xlu0 %579 }
  0x8c   : > { %v571_v28 = vpop.permute.xlu1 %570 }
  0x8e   : > { %v567_v29 = vpop.permute.xlu0 %566 }
  0x90   : > { %v573_v30 = vpop.permute.xlu1 %572 }
  0x92   : > { %v569_v41 = vpop.permute.xlu0 %568 }
  0x9a   : > { %v549_v9 = vpop.permute.xlu1 %548 }
  0x9b   : > { %v649_v26 = vsel %vm643_vm7, %v1471_v2, %v549_v9 }
  0x9c   : > { %v660_v42 = vsel %vm656_vm8, %v649_v26, %v569_v41 }
  0x9d   : > { %v547_v0 = vpop.permute.xlu0 %546 }
  0x9e   : > { %v646_v57 = vsel %vm643_vm7, %v1034_v56, %v547_v0 }
  0x9f   : > { %v658_v63 = vsel %vm656_vm8, %v646_v57, %v567_v29 }
  0xa0   : > { %v667_v53 = vsel %vm665_vm10, %v658_v63, %v580_v23  ;;  %v1069_v23 = vld [vmem:[%s1555_s3] ss:$0 sm:$0xff] }
  0xa3   : > { %v553_v31 = vpop.permute.xlu1 %552 }
  0xa4   : > { %v655_v58 = vsel %vm643_vm7, %v1460_v22, %v553_v31 }
  0xa5   : > { %v664_v3 = vsel %vm656_vm8, %v655_v58, %v573_v30 }
  0xa7   : > { %v586_v34 = vpop.permute.xlu1 %585 }
  0xa8   : > { %v551_v35 = vpop.permute.xlu0 %550  ;;  %v673_v56 = vsel %vm665_vm10, %v664_v3, %v586_v34 }
  0xa9   : > { %v652_v51 = vsel %vm643_vm7, %v1036_v47, %v551_v35 }
  0xaa   : > { %v662_v54 = vsel %vm656_vm8, %v652_v51, %v571_v28 }
  0xab   : > { %v597_v46 = vpop.permute.xlu1 %596  ;;  %v671_v59 = vsel %vm665_vm10, %v662_v54, %v584_v20  ;;  %v1068_v20 = vld [vmem:[%s1554_s2] ss:$0 sm:$0xff] }
  0xac   : > { %v582_v36 = vpop.permute.xlu0 %581  ;;  %v680_v25 = vsel %vm674_vm9, %v671_v59, %v597_v46 }
  0xad   : > { %v669_v43 = vsel %vm665_vm10, %v660_v42, %v582_v36 }
  0xaf   : > { %v599_v18 = vpop.permute.xlu1 %598 }
  0xb0   : > { %v593_v38 = vpop.permute.xlu0 %592  ;;  %v682_v12 = vsel %vm674_vm9, %v673_v56, %v599_v18 }
  0xb1   : > { %v676_v22 = vsel %vm674_vm9, %v667_v53, %v593_v38 }
  0xb3   : > { %v610_v40 = vpop.permute.xlu1 %609 }
  0xb4   : > { %v595_v44 = vpop.permute.xlu0 %594  ;;  %v689_v4 = vsel %vm683_vm11, %v680_v25, %v610_v40 }
  0xb5   : > { %v678_v32 = vsel %vm674_vm9, %v669_v43, %v595_v44 }
  0xb7   : > { %v612_v50 = vpop.permute.xlu1 %611 }
  0xb8   : > { %v606_v45 = vpop.permute.xlu0 %605  ;;  %v691_v39 = vsel %vm683_vm11, %v682_v12, %v612_v50 }
  0xb9   : > { %v685_v37 = vsel %vm683_vm11, %v676_v22, %v606_v45 }
  0xbb   : > { %v620_v27 = vpop.permute.xlu1 %619 }
  0xbc   : > { %v608_v48 = vpop.permute.xlu0 %607  ;;  %v698_v14 = vsel %vm692_vm12, %v689_v4, %v620_v27 }
  0xbd   : > { %v687_v7 = vsel %vm683_vm11, %v678_v32, %v608_v48 }
  0xbf   : > { %v622_v49 = vpop.permute.xlu1 %621 }
  0xc0   : > { %v616_v21 = vpop.permute.xlu0 %615  ;;  %v700_v19 = vsel %vm692_vm12, %v691_v39, %v622_v49 }
  0xc1   : > { %v694_v33 = vsel %vm692_vm12, %v685_v37, %v616_v21 }
  0xc3   : > { %v630_v52 = vpop.permute.xlu1 %629 }
  0xc4   : > { %v618_v55 = vpop.permute.xlu0 %617  ;;  %v707_v8 = vsel %vm701_vm13, %v698_v14, %v630_v52 }
  0xc5   : > { %v696_v15 = vsel %vm692_vm12, %v687_v7, %v618_v55 }
  0xc7   : > { %v632_v60 = vpop.permute.xlu1 %631 }
  0xc8   : > { %v626_v61 = vpop.permute.xlu0 %625  ;;  %v709_v2 = vsel %vm701_vm13, %v700_v19, %v632_v60 }
  0xc9   : > { %v703_v17 = vsel %vm701_vm13, %v694_v33, %v626_v61 }
  0xcb   : > { %v640_v10 = vpop.permute.xlu1 %639 }
  0xcc   : > { %v628_v13 = vpop.permute.xlu0 %627  ;;  %v716_v16 = vsel %vm710_vm14, %v707_v8, %v640_v10 }
  0xcd   : > { %1113 = vmatprep.mubr.msk.bf16.mxu1 %vm739_vm15, %v716_v16  ;;  %v705_v1 = vsel %vm701_vm13, %v696_v15, %v628_v13 }
  0xcf   : > { %v642_v24 = vpop.permute.xlu1 %641 }
  0xd0   : > { %v636_v47 = vpop.permute.xlu0 %635  ;;  %v718_v5 = vsel %vm710_vm14, %v709_v2, %v642_v24 }
  0xd1   : > { %v712_v11 = vsel %vm710_vm14, %v703_v17, %v636_v47  ;;  %1114 = vmatmul.mubr.msk.bf16.vlgmr.msra.gmra.mrb[0].mxu1 %vm739_vm15, %v718_v5 }
  0xd2   : > { %1109 = vmatprep.mubr.msk.bf16.mxu0 %vm739_vm15, %v712_v11 }
  0xd4   : > { %v638_v6 = vpop.permute.xlu0 %637 }
  0xd5   : > { %v714_v62 = vsel %vm710_vm14, %v705_v1, %v638_v6 }
  0xd6   : > { %1110 = vmatmul.mubr.msk.bf16.vlgmr.msra.gmra.mrb[0].mxu0 %vm739_vm15, %v714_v62 }
 0x1a4   : > { %v1115_v28 = vpop.f32.mrb[0].mxu1 }
 0x1a5   : > { %v830_v29 = vmul.f32 %v1115_v28, %v1068_v20  ;;  %v802_v30 = vpop.f32.mrb[1].mxu1 }
 0x1a6   : > { %v828_v41 = vmul.f32 %v1068_v20, %v802_v30  ;;  %v1116_v9 = vpop.f32.mrb[2].mxu1 }
 0x1a7   : > { %v845_v0 = vadd.f32 %v1069_v23, %v830_v29  ;;  %v831_v31 = vmul.f32 %v1116_v9, %v1068_v20  ;;  %v805_v34 = vpop.f32.mrb[3].mxu1 }
 0x1a8   : > { %v843_v35 = vadd.f32 %v1069_v23, %v828_v41  ;;  %v829_v46 = vmul.f32 %v1068_v20, %v805_v34 }
 0x1a9   : > { %v1111_v36 = vpop.f32.mrb[0].mxu0  ;;  %v846_v18 = vadd.f32 %v1069_v23, %v831_v31  ;;  %v853_v50 = vmax.f32 %v845_v0, 0.0 }
 0x1aa   : > { %v826_v38 = vmul.f32 %v1111_v36, %v1068_v20  ;;  %v786_v40 = vpop.f32.mrb[1].mxu0  ;;  %v844_v44 = vadd.f32 %v1069_v23, %v829_v46  ;;  %v851_v21 = vmax.f32 %v843_v35, 0.0 }
 0x1ab   : > { %v824_v45 = vmul.f32 %v1068_v20, %v786_v40  ;;  %v1112_v27 = vpop.f32.mrb[2].mxu0  ;;  %v854_v48 = vmax.f32 %v846_v18, 0.0 }
 0x1ac   : > { %v841_v49 = vadd.f32 %v1069_v23, %v826_v38  ;;  %v827_v51 = vmul.f32 %v1112_v27, %v1068_v20  ;;  %v789_v52 = vpop.f32.mrb[3].mxu0  ;;  %v852_v54 = vmax.f32 %v844_v44, 0.0 }
 0x1ad   : > { %v839_v55 = vadd.f32 %v1069_v23, %v824_v45  ;;  %v1091_v57 = vpack.c.bf16 %v854_v48, %v853_v50  ;;  %v825_v58 = vmul.f32 %v1068_v20, %v789_v52 }
 0x1ae   : > { %v842_v59 = vadd.f32 %v1069_v23, %v827_v51  ;;  %v1086_v60 = vpack.c.bf16 %v852_v54, %v851_v21  ;;  %v849_v61 = vmax.f32 %v841_v49, 0.0 }
 0x1af   : > { %1095 = vst [vmem:[%s293_s22 + $0x18] sm:$0xff] %v1091_v57   ;;  %v840_v25 = vadd.f32 %v1069_v23, %v825_v58  ;;  %v847_v4 = vmax.f32 %v839_v55, 0.0 }
 0x1b0   : > { %v850_v63 = vmax.f32 %v842_v59, 0.0  ;;  %1094 = vst [vmem:[%s293_s22 + $0x10] sm:$0xff] %v1086_v60  }
 0x1b1   : > { %v848_v3 = vmax.f32 %v840_v25, 0.0 }
 0x1b2   : > { %v1081_v14 = vpack.c.bf16 %v850_v63, %v849_v61 }
 0x1b3   : > { %v1076_v56 = vpack.c.bf16 %v848_v3, %v847_v4 }
 0x1b4   : > { %1093 = vst [vmem:[%s293_s22 + $0x8] sm:$0xff] %v1081_v14  }
 0x1b5   : > { %1077 = vst [vmem:[%s293_s22] sm:$0xff] %v1076_v56  }
 0x1b6 PF: > { %s14_s17 = sadd.s32 1, %s1192_s17   ;;  %s1561_s15 = smov %s1188_s16 }
 0x1b7   : > { %p11_p5 = scmp.ge.s32.totalorder %s14_s17, 4   ;;  %s1562_s16 = smov %s1564_s18 }
 0x1b9   :  { %13 = sbr.rel (!%p11_p5) target bundleno = 2 (0x2), region = 75 }

// kernel: down_forward.5
= control target key start
LH: loop header
LB: loop body
LE: loop exit
PB: predicated region body
PF: predicated region fallthrough
CT: control target
= control target key end

     0   :  { %s2187_s15 = smov 0   ;;  %s2189_s16 = smov 0   ;;  %s2683_s0 = inlined_call_operand.vmem [shape: bf16[2,1,10,10,128], index: 0, kind: input, shape index: {}]   ;;  %s2684_s1 = inlined_call_operand.vmem [shape: bf16[1152,128], index: 1, kind: input, shape index: {}]   ;;  %s2685_s2 = inlined_call_operand.vmem [shape: f32[1,128], index: 2, kind: input, shape index: {}]   ;;  %s2686_s3 = inlined_call_operand.vmem [shape: f32[1,128], index: 3, kind: input, shape index: {}]   ;;  %s2687_s4 = inlined_call_operand.vmem [shape: f32[2,8,8,128], index: 4, kind: output, shape index: {}]  }
   0x1   :  { %s2191_s17 = smov 0  }
   0x2 LB: > { %s33_s18 = sadd.s32 1, %s2156_s16  ;;  %p1702_p0 = scmp.ge.s32.totalorder %s2160_s17, 1  ;;  %s2160_s17 = sphi %s2191_s17, %s14_s17   ;;  %s2156_s16 = sphi %s2189_s16, %s2693_s16   ;;  %s2152_s15 = sphi %s2187_s15, %s2692_s15  }
   0x3   : > { %p35_p1 = scmp.ge.s32.totalorder %s33_s18, 2  ;;  %p216_p2 = scmp.lt.s32.totalorder %s2160_s17, 3 }
   0x5   : > { %s2695_s18 = smov (%p35_p1, %s33_s18), 0  ;;  %p217_p3 = pnand %p1702_p0, %p216_p2 }
   0x6   : > { %v2057_v0 = vld [vmem:[%s2684_s1 + $0x40] sm:$0xff] (!%p217_p3)   ;;  %v2061_v4 = vld [vmem:[%s2684_s1 + $0x48] sm:$0xff] (!%p217_p3)   ;;  %v2065_v8 = vld [vmem:[%s2684_s1 + $0x50] sm:$0xff] (!%p217_p3)   ;;  %p263_p4 = scmp.lt.s32.totalorder (!%p217_p3), %s2152_s15, 1  ;;  %vm447_vm0 = vcmask (!%p217_p3), 1042432   ;;  %vm448_vm1 = vcmask (!%p217_p3), 1046532  }
   0x7   : > { %220 = sbr.rel (%p217_p3) target bundleno = 329 (0x149), region = 36  ;;  %v2058_v1 = vld [vmem:[%s2684_s1 + $0xc0] sm:$0xff] (!%p217_p3)   ;;  %1820 = vmatprep.subr.bf16.mxu0 (!%p217_p3), %v2057_v0  ;;  %v2062_v5 = vld [vmem:[%s2684_s1 + $0xc8] sm:$0xff] (!%p217_p3)   ;;  %v2066_v9 = vld [vmem:[%s2684_s1 + $0xd0] sm:$0xff] (!%p217_p3)   ;;  %vm316_vm2 = vsmask.f32 (!%p217_p3), 3328 }
   0x8   : > { %v2059_v2 = vld [vmem:[%s2684_s1] sm:$0xff] (!%p217_p3)   ;;  %1860 = vmatprep.subr.bf16.mxu1 (!%p217_p3), %v2058_v1  ;;  %v2063_v6 = vld [vmem:[%s2684_s1 + $0x8] sm:$0xff] (!%p217_p3)   ;;  %v2067_v10 = vld [vmem:[%s2684_s1 + $0x10] sm:$0xff] (!%p217_p3)   ;;  %vm317_vm3 = vsmask.f32 (!%p217_p3), 7440 }
   0x9   : > { %v2060_v3 = vld [vmem:[%s2684_s1 + $0x80] sm:$0xff] (!%p217_p3)   ;;  %1821 = vmatpush3.bf16.msra.mxu0 (!%p217_p3), %v2059_v2  ;;  %v2064_v7 = vld [vmem:[%s2684_s1 + $0x88] sm:$0xff] (!%p217_p3)   ;;  %v2068_v11 = vld [vmem:[%s2684_s1 + $0x90] sm:$0xff] (!%p217_p3)  }
   0xa   : > { %1861 = vmatpush3.bf16.msra.mxu1 (!%p217_p3), %v2060_v3  ;;  %1822 = vmatprep.subr.bf16.mxu0 (!%p217_p3), %v2061_v4  ;;  %v2069_v12 = vld [vmem:[%s2684_s1 + $0x58] sm:$0xff] (!%p217_p3)   ;;  %v2073_v16 = vld [vmem:[%s2684_s1 + $0x60] sm:$0xff] (!%p217_p3)   ;;  %v2077_v20 = vld [vmem:[%s2684_s1 + $0x68] sm:$0xff] (!%p217_p3)  }
   0xb   : > { %1862 = vmatprep.subr.bf16.mxu1 (!%p217_p3), %v2062_v5  ;;  %v2070_v13 = vld [vmem:[%s2684_s1 + $0xd8] sm:$0xff] (!%p217_p3)   ;;  %v2074_v17 = vld [vmem:[%s2684_s1 + $0xe0] sm:$0xff] (!%p217_p3)   ;;  %v2078_v21 = vld [vmem:[%s2684_s1 + $0xe8] sm:$0xff] (!%p217_p3)  }
   0xc   : > { %v2071_v14 = vld [vmem:[%s2684_s1 + $0x18] sm:$0xff] (!%p217_p3)   ;;  %v2075_v18 = vld [vmem:[%s2684_s1 + $0x20] sm:$0xff] (!%p217_p3)   ;;  %v2079_v22 = vld [vmem:[%s2684_s1 + $0x28] sm:$0xff] (!%p217_p3)  }
   0xd   : > { %1823 = vmatpush3.bf16.msra.mxu0 (!%p217_p3), %v2063_v6  ;;  %v2072_v15 = vld [vmem:[%s2684_s1 + $0x98] sm:$0xff] (!%p217_p3)   ;;  %v2076_v19 = vld [vmem:[%s2684_s1 + $0xa0] sm:$0xff] (!%p217_p3)   ;;  %v2080_v23 = vld [vmem:[%s2684_s1 + $0xa8] sm:$0xff] (!%p217_p3)  }
   0xe   : > { %1863 = vmatpush3.bf16.msra.mxu1 %v2064_v7  ;;  %1824 = vmatprep.subr.bf16.mxu0 %v2065_v8  ;;  %s2697_s15 = smov (!%p263_p4, %s2152_s15), 1  ;;  %v2081_v24 = vld [vmem:[%s2684_s1 + $0x70] sm:$0xff]   ;;  %v2085_v28 = vld [vmem:[%s2684_s1 + $0x78] sm:$0xff]   ;;  %v2091_v52 = vld [vmem:[%s2684_s1 + $0x140] sm:$0xff]  }
   0xf   : > { %1864 = vmatprep.subr.bf16.mxu1 %v2066_v9  ;;  %v2082_v25 = vld [vmem:[%s2684_s1 + $0xf0] sm:$0xff]   ;;  %s2032_s27 = smul.u32 80, %s2697_s15  ;;  %v2086_v29 = vld [vmem:[%s2684_s1 + $0xf8] sm:$0xff]   ;;  %v2092_v53 = vld [vmem:[%s2684_s1 + $0x1c0] sm:$0xff]   ;;  %s1819_s20 = sshll.u32 %s2697_s15, 6 }
  0x10   : > { %v2083_v26 = vld [vmem:[%s2684_s1 + $0x30] sm:$0xff]   ;;  %v2087_v30 = vld [vmem:[%s2684_s1 + $0x38] sm:$0xff]   ;;  %vm2342_vm4 = vmor %vm447_vm0, %vm448_vm1  ;;  %s2663_s23 = scalar_lea.vmem %s2687_s4, %s1819_s20 }
  0x11   : > { %1825 = vmatpush3.bf16.msra.mxu0 %v2067_v10  ;;  %v2084_v27 = vld [vmem:[%s2684_s1 + $0xb0] sm:$0xff]   ;;  %s2305_s12 = scalar_lea.vmem %s2683_s0, %s2032_s27  ;;  %v2088_v31 = vld [vmem:[%s2684_s1 + $0xb8] sm:$0xff]   ;;  %vm2348_vm5 = vmor %vm316_vm2, %vm317_vm3 }
  0x12   : > { %1865 = vmatpush3.bf16.msra.mxu1 %v2068_v11  ;;  %1826 = vmatprep.subr.bf16.mxu0 %v2069_v12  ;;  %v2314_v32 = vld [vmem:[%s2305_s12] sm:$0xf]  ;;  %v297_v33 = vld [vmem:[%s2305_s12 + $0x4] sm:$0x1]  ;;  %v2318_v34 = vld [vmem:[%s2305_s12 + $0x8] sm:$0xf] }
  0x13   : > { %1866 = vmatprep.subr.bf16.mxu1 %v2070_v13  ;;  %v299_v35 = vld [vmem:[%s2305_s12 + $0xc] sm:$0x1]  ;;  %v2322_v36 = vld [vmem:[%s2305_s12 + $0x10] sm:$0xf]  ;;  %v2325_v37 = vld [vmem:[%s2305_s12 + $0x14] sm:$0x1]  ;;  %v1716_v11 = vcombine.low %v2314_v32, %v2318_v34 }
  0x14   : > { %v320_v38 = vshrl.u32 %v2314_v32, 16  ;;  %v323_v39 = vshll.u32 %v2314_v32, 16  ;;  %v329_v40 = vshll.u32 %v297_v33, 16  ;;  %v334_v41 = vshrl.u32 %v2318_v34, 16  ;;  %v2093_v7 = vld [vmem:[%s2684_s1 + $0x100] sm:$0xff]   ;;  %v2095_v13 = vld [vmem:[%s2684_s1 + $0x148] sm:$0xff]  }
  0x15   : > { %1827 = vmatpush3.bf16.msra.mxu0 %v2071_v14  ;;  %v337_v42 = vshll.u32 %v2318_v34, 16  ;;  %v343_v43 = vshll.u32 %v299_v35, 16  ;;  %v348_v46 = vshrl.u32 %v2322_v36, 16  ;;  %v351_v47 = vshll.u32 %v2322_v36, 16  ;;  %v2094_v8 = vld [vmem:[%s2684_s1 + $0x180] sm:$0xff]   ;;  %v2096_v14 = vld [vmem:[%s2684_s1 + $0x1c8] sm:$0xff]  }
  0x16   : > { %1867 = vmatpush3.bf16.msra.mxu1 %v2072_v15  ;;  %1828 = vmatprep.subr.bf16.mxu0 %v2073_v16  ;;  %v322_v44 = vrot.slane %v320_v38, 4  ;;  %v325_v45 = vrot.slane %v323_v39, 5  ;;  %v331_v48 = vrot.slane %v329_v40, 5  ;;  %v336_v49 = vrot.slane %v334_v41, 4  ;;  %v2103_v39 = vld [vmem:[%s2684_s1 + $0x110] sm:$0xff]  }
  0x17   : > { %1868 = vmatprep.subr.bf16.mxu1 %v2074_v17  ;;  %v339_v50 = vrot.slane %v337_v42, 5  ;;  %v345_v51 = vrot.slane %v343_v43, 5  ;;  %v350_v55 = vrot.slane %v348_v46, 4  ;;  %v353_v56 = vrot.slane %v351_v47, 5  ;;  %v2104_v43 = vld [vmem:[%s2684_s1 + $0x190] sm:$0xff]  }
  0x18   : > { %v326_v54 = vor.u32 %v325_v45, %v322_v44  ;;  %v357_v57 = vshll.u32 %v2325_v37, 16  ;;  %v452_v61 = vrot.slane %v297_v33, 5  ;;  %v456_v62 = vrot.slane %v299_v35, 5  ;;  %v2105_v45 = vld [vmem:[%s2684_s1 + $0x158] sm:$0xff]  }
  0x19   : > { %1829 = vmatpush3.bf16.msra.mxu0 %v2075_v18  ;;  %v340_v60 = vor.u32 %v339_v50, %v336_v49  ;;  %v1728_v63 = vcombine.low %v2318_v34, %v2322_v36  ;;  %v1706_v1 = vrot.slane %v2314_v32, 9  ;;  %v354_v3 = vor.u32 %v353_v56, %v350_v55  ;;  %v2106_v49 = vld [vmem:[%s2684_s1 + $0x1d8] sm:$0xff]  }
  0x1a   : > { %1869 = vmatpush3.bf16.msra.mxu1 %v2076_v19  ;;  %1830 = vmatprep.subr.bf16.mxu0 %v2077_v20  ;;  %v327_v0 = vrot.slane %v326_v54, 4  ;;  %v1707_v4 = vrot.slane %v2318_v34, 9  ;;  %v359_v10 = vrot.slane %v357_v57, 5  ;;  %v1708_v17 = vrot.slane %v2322_v36, 9  ;;  %v2098_v20 = vld [vmem:[%s2684_s1 + $0x188] sm:$0xff]   ;;  %v2107_v50 = vld [vmem:[%s2684_s1 + $0x118] sm:$0xff]  }
  0x1b   : > { %1870 = vmatprep.subr.bf16.mxu1 %v2078_v21  ;;  %v341_v2 = vrot.slane %v340_v60, 4  ;;  %1279 = vmatprep.mubr.bf16.mxu1 %v1728_v63  ;;  %v453_v6 = vsel %vm2342_vm4, %v1706_v1, %v452_v61  ;;  %v460_v18 = vrot.slane %v2325_v37, 5  ;;  %v355_v19 = vrot.slane %v354_v3, 4  ;;  %v2097_v21 = vld [vmem:[%s2684_s1 + $0x108] sm:$0xff]   ;;  %v2102_v37 = vld [vmem:[%s2684_s1 + $0x1d0] sm:$0xff]   ;;  %v2108_v54 = vld [vmem:[%s2684_s1 + $0x198] sm:$0xff]  }
  0x1c   : > { %v332_v5 = vsel %vm2348_vm5, %v327_v0, %v331_v48  ;;  %v2374_v12 = vsel %vm2342_vm4, %v1707_v4, %v456_v62  ;;  %v305_v57 = vld [vmem:[%s2305_s12 + $0x24] sm:$0x1]  ;;  %v306_v60 = vld [vmem:[%s2305_s12 + $0x28] sm:$0xf]  ;;  %v307_v61 = vld [vmem:[%s2305_s12 + $0x2c] sm:$0x1] }
  0x1d   : > { %1831 = vmatpush3.bf16.msra.mxu0 %v2079_v22  ;;  %v2368_v9 = vsel %vm2348_vm5, %v341_v2, %v345_v51  ;;  %v1724_v16 = vcombine.low %v453_v6, %v2374_v12  ;;  %v302_v22 = vld [vmem:[%s2305_s12 + $0x18] sm:$0xf]  ;;  %v2429_v47 = vsel %vm2348_vm5, %v355_v19, %v359_v10  ;;  %v390_v63 = vshrl.u32 %v306_v60, 16  ;;  %v2457_v2 = vld [vmem:[%s2305_s12 + $0x30] sm:$0xf] }
  0x1e   : > { %1871 = vmatpush3.bf16.msra.mxu1 %v2080_v23  ;;  %1832 = vmatprep.subr.bf16.mxu0 %v2081_v24  ;;  %v1720_v15 = vcombine.low %v332_v5, %v2368_v9  ;;  %v303_v23 = vld [vmem:[%s2305_s12 + $0x1c] sm:$0x1]  ;;  %v2395_v24 = vld [vmem:[%s2305_s12 + $0x20] sm:$0xf]  ;;  %v393_v0 = vshll.u32 %v306_v60, 16  ;;  %v399_v1 = vshll.u32 %v307_v61, 16  ;;  %v1730_v4 = vcombine.low %v306_v60, %v2457_v2 }
  0x1f   : > { %1872 = vmatprep.subr.bf16.mxu1 %v2082_v25  ;;  %v362_v25 = vshrl.u32 %v302_v22, 16  ;;  %v464_v32 = vrot.slane %v303_v23, 5  ;;  %v376_v40 = vshrl.u32 %v2395_v24, 16  ;;  %v379_v44 = vshll.u32 %v2395_v24, 16 }
  0x20   : > { %1214 = vmatprep.mubr.bf16.mxu0 %v1720_v15  ;;  %v1710_v55 = vrot.slane %v2395_v24, 9  ;;  %v468_v5 = vrot.slane %v305_v57, 5  ;;  %v401_v10 = vrot.slane %v399_v1, 5  ;;  %v1711_v15 = vrot.slane %v306_v60, 9 }
  0x21   : > { %1833 = vmatpush3.bf16.msra.mxu0 %v2083_v26  ;;  %v365_v26 = vshll.u32 %v302_v22, 16  ;;  %v364_v33 = vrot.slane %v362_v25, 4  ;;  %v378_v46 = vrot.slane %v376_v40, 4  ;;  %v381_v51 = vrot.slane %v379_v44, 5  ;;  %v310_v40 = vld [vmem:[%s2305_s12 + $0x38] sm:$0xf] }
  0x22   : > { %1873 = vmatpush3.bf16.msra.mxu1 %v2084_v27  ;;  %1834 = vmatprep.subr.bf16.mxu0 %v2085_v28  ;;  %v371_v27 = vshll.u32 %v303_v23, 16  ;;  %v1729_v28 = vcombine.low %v302_v22, %v2395_v24  ;;  %v404_v19 = vshrl.u32 %v2457_v2, 16 }
  0x23   : > { %1874 = vmatprep.subr.bf16.mxu1 %v2086_v29  ;;  %v2101_v29 = vld [vmem:[%s2684_s1 + $0x150] sm:$0xff]   ;;  %v367_v34 = vrot.slane %v365_v26, 5  ;;  %v382_v62 = vor.u32 %v381_v51, %v378_v46  ;;  %v421_v46 = vshll.u32 %v310_v40, 16 }
  0x24   : > { %v373_v35 = vrot.slane %v371_v27, 5  ;;  %v2115_v27 = vld [vmem:[%s2684_s1 + $0x168] sm:$0xff]  }
  0x25   : > { %1835 = vmatpush3.bf16.msra.mxu0 %v2087_v30  ;;  %v2403_v30 = vsel %vm2342_vm4, %v1708_v17, %v460_v18  ;;  %v368_v41 = vor.u32 %v367_v34, %v364_v33  ;;  %v383_v3 = vrot.slane %v382_v62, 4  ;;  %v2113_v18 = vld [vmem:[%s2684_s1 + $0x120] sm:$0xff]   ;;  %v2117_v33 = vld [vmem:[%s2684_s1 + $0x128] sm:$0xff]   ;;  %v2122_v62 = vld [vmem:[%s2684_s1 + $0x1f0] sm:$0xff]  }
  0x26   : > { %1875 = vmatpush3.bf16.msra.mxu1 %v2088_v31  ;;  %1900 = vmatprep.subr.bf16.mxu0 %v2091_v52  ;;  %v1709_v31 = vrot.slane %v302_v22, 9 }
  0x27   : > { %1940 = vmatprep.subr.bf16.mxu1 %v2092_v53  ;;  %v369_v48 = vrot.slane %v368_v41, 4  ;;  %v2443_v53 = vcombine.low %v2322_v36, %v302_v22  ;;  %v385_v36 = vshll.u32 %v305_v57, 16  ;;  %v407_v22 = vshll.u32 %v2457_v2, 16  ;;  %v311_v41 = vld [vmem:[%s2305_s12 + $0x3c] sm:$0x1] }
  0x28   : > { %1215 = vmatmul.mubr.bf16.vlgmr.msra.gmra.mrb[0].mxu0 %v1716_v11  ;;  %v2410_v38 = vsel %vm2342_vm4, %v1709_v31, %v464_v32  ;;  %v2111_v11 = vld [vmem:[%s2684_s1 + $0x160] sm:$0xff]   ;;  %v2503_v32 = vcombine.low %v2395_v24, %v306_v60  ;;  %v1712_v24 = vrot.slane %v2457_v2, 9  ;;  %v423_v60 = vrot.slane %v421_v46, 5 }
  0x29   : > { %1280 = vmatmul.mubr.bf16.vlgmr.msra.gmra.mrb[0].mxu1 %v1724_v16  ;;  %1901 = vmatpush3.bf16.msra.mxu0 %v2093_v7  ;;  %v2418_v42 = vcombine.low %v2403_v30, %v2410_v38  ;;  %v2440_v52 = vsel %vm2348_vm5, %v369_v48, %v373_v35  ;;  %v387_v6 = vrot.slane %v385_v36, 5  ;;  %v392_v7 = vrot.slane %v390_v63, 4 }
  0x2a   : > { %1941 = vmatpush3.bf16.msra.mxu1 %v2094_v8  ;;  %1902 = vmatprep.subr.bf16.mxu0 %v2095_v13  ;;  %v2451_v56 = vcombine.low %v2429_v47, %v2440_v52  ;;  %v395_v8 = vrot.slane %v393_v0, 5  ;;  %v2112_v13 = vld [vmem:[%s2684_s1 + $0x1e0] sm:$0xff]   ;;  %v472_v16 = vrot.slane %v307_v61, 5  ;;  %v409_v34 = vrot.slane %v407_v22, 5  ;;  %v2121_v61 = vld [vmem:[%s2684_s1 + $0x170] sm:$0xff]  }
  0x2b   : > { %1942 = vmatprep.subr.bf16.mxu1 %v2096_v14  ;;  %1287 = vmatprep.mubr.bf16.mxu1 %v1729_v28  ;;  %v2470_v14 = vsel %vm2342_vm4, %v1710_v55, %v468_v5  ;;  %v2486_v23 = vsel %vm2348_vm5, %v383_v3, %v387_v6  ;;  %v2116_v28 = vld [vmem:[%s2684_s1 + $0x1e8] sm:$0xff]   ;;  %v427_v48 = vshll.u32 %v311_v41, 16  ;;  %v1713_v63 = vrot.slane %v310_v40, 9  ;;  %v2124_v6 = vld [vmem:[%s2684_s1 + $0x1b0] sm:$0xff]  }
  0x2c   : > { %1222 = vmatprep.mubr.bf16.mxu0 %v2451_v56  ;;  %v396_v17 = vor.u32 %v395_v8, %v392_v7  ;;  %v480_v0 = vrot.slane %v311_v41, 5  ;;  %v1733_v41 = vcombine.low %v2440_v52, %v2486_v23 }
  0x2d   : > { %1903 = vmatpush3.bf16.msra.mxu0 %v2097_v21  ;;  %v2114_v21 = vld [vmem:[%s2684_s1 + $0x1a0] sm:$0xff]   ;;  %v429_v3 = vrot.slane %v427_v48, 5 }
  0x2e   : > { %1943 = vmatpush3.bf16.msra.mxu1 %v2098_v20  ;;  %1904 = vmatprep.subr.bf16.mxu0 %v2101_v29  ;;  %v2478_v20 = vsel %vm2342_vm4, %v1711_v15, %v472_v16  ;;  %v397_v25 = vrot.slane %v396_v17, 4  ;;  %v406_v29 = vrot.slane %v404_v19, 4  ;;  %v2541_v5 = vsel %vm2342_vm4, %v1713_v63, %v480_v0  ;;  %v2127_v17 = vld [vmem:[%s2684_s1 + $0x138] sm:$0xff]  }
  0x2f   : > { %1944 = vmatprep.subr.bf16.mxu1 %v2102_v37  ;;  %v2490_v26 = vcombine.low %v2470_v14, %v2478_v20  ;;  %v2118_v37 = vld [vmem:[%s2684_s1 + $0x1a8] sm:$0xff]   ;;  %v2565_v16 = vcombine.low %v2457_v2, %v310_v40  ;;  %v2128_v19 = vld [vmem:[%s2684_s1 + $0x1b8] sm:$0xff]   ;;  %v2129_v2 = vld [vmem:[%s2684_s1 + $0x200] sm:$0xff]  }
  0x30   : > { %1223 = vmatmul.mubr.bf16.gmra.mrb[4].mxu0 %v2443_v53  ;;  %v2500_v31 = vsel %vm2348_vm5, %v397_v25, %v401_v10 }
  0x31   : > { %1288 = vmatmul.mubr.bf16.gmra.mrb[4].mxu1 %v2418_v42  ;;  %1905 = vmatpush3.bf16.msra.mxu0 %v2103_v39  ;;  %v2511_v35 = vcombine.low %v2486_v23, %v2500_v31  ;;  %v309_v39 = vld [vmem:[%s2305_s12 + $0x34] sm:$0x1] }
  0x32   : > { %1945 = vmatpush3.bf16.msra.mxu1 %v2104_v43  ;;  %1906 = vmatprep.subr.bf16.mxu0 %v2105_v45  ;;  %v410_v43 = vor.u32 %v409_v34, %v406_v29  ;;  %v413_v44 = vshll.u32 %v309_v39, 16  ;;  %v418_v45 = vshrl.u32 %v310_v40, 16  ;;  %v476_v51 = vrot.slane %v309_v39, 5  ;;  %v313_v29 = vld [vmem:[%s2305_s12 + $0x44] sm:$0x1] }
  0x33   : > { %1946 = vmatprep.subr.bf16.mxu1 %v2106_v49  ;;  %1295 = vmatprep.mubr.bf16.mxu1 %v1730_v4  ;;  %v2522_v49 = vld [vmem:[%s2305_s12 + $0x40] sm:$0xf]  ;;  %v2123_v4 = vld [vmem:[%s2684_s1 + $0x130] sm:$0xff]   ;;  %v1737_v34 = vcombine.low %v2410_v38, %v2470_v14  ;;  %v2132_v38 = vld [vmem:[%s2684_s1 + $0x218] sm:$0xff]   ;;  %v500_v23 = vrot.slane %v313_v29, 5 }
  0x34   : > { %1230 = vmatprep.mubr.bf16.mxu0 %v2511_v35  ;;  %v415_v55 = vrot.slane %v413_v44, 5  ;;  %v420_v57 = vrot.slane %v418_v45, 4  ;;  %v2534_v36 = vsel %vm2342_vm4, %v1712_v24, %v476_v51  ;;  %v483_v22 = vshrl.u32 %v2522_v49, 16 }
  0x35   : > { %1907 = vmatpush3.bf16.msra.mxu0 %v2107_v50  ;;  %v1731_v50 = vcombine.low %v310_v40, %v2522_v49  ;;  %v2552_v10 = vcombine.low %v2534_v36, %v2541_v5  ;;  %v486_v25 = vshll.u32 %v2522_v49, 16  ;;  %v1738_v48 = vcombine.low %v2478_v20, %v2534_v36  ;;  %v2134_v20 = vld [vmem:[%s2684_s1 + $0x228] sm:$0xff]   ;;  %v2137_v36 = vld [vmem:[%s2684_s1 + $0x238] sm:$0xff]  }
  0x36   : > { %1947 = vmatpush3.bf16.msra.mxu1 %v2108_v54  ;;  %1908 = vmatprep.subr.bf16.mxu0 %v2111_v11  ;;  %v411_v54 = vrot.slane %v410_v43, 4  ;;  %v424_v1 = vor.u32 %v423_v60, %v420_v57  ;;  %v2125_v11 = vld [vmem:[%s2684_s1 + $0x178] sm:$0xff]   ;;  %v1714_v52 = vrot.slane %v2522_v49, 9  ;;  %v2136_v60 = vld [vmem:[%s2684_s1 + $0x230] sm:$0xff]  }
  0x37   : > { %1948 = vmatprep.subr.bf16.mxu1 %v2112_v13  ;;  %v2126_v13 = vld [vmem:[%s2684_s1 + $0x1f8] sm:$0xff]  }
  0x38   : > { %1231 = vmatmul.mubr.bf16.gmra.mrb[8].mxu0 %v2503_v32  ;;  %v2548_v7 = vsel %vm2348_vm5, %v411_v54, %v415_v55  ;;  %v425_v8 = vrot.slane %v424_v1, 4  ;;  %v501_v54 = vsel %vm2342_vm4, %v1714_v52, %v500_v23 }
  0x39   : > { %1909 = vmatpush3.bf16.msra.mxu0 %v2113_v18  ;;  %1296 = vmatmul.mubr.bf16.gmra.mrb[8].mxu1 %v2490_v26  ;;  %v1734_v57 = vcombine.low %v2500_v31, %v2548_v7  ;;  %v1739_v59 = vcombine.low %v2541_v5, %v501_v54 }
  0x3a   : > { %1949 = vmatpush3.bf16.msra.mxu1 %v2114_v21  ;;  %1910 = vmatprep.subr.bf16.mxu0 %v2115_v27  ;;  %v2562_v15 = vsel %vm2348_vm5, %v425_v8, %v429_v3  ;;  %v1736_v21 = vcombine.low %v2374_v12, %v2403_v30  ;;  %v2130_v12 = vld [vmem:[%s2684_s1 + $0x208] sm:$0xff]   ;;  %v485_v30 = vrot.slane %v483_v22, 4  ;;  %v1732_v27 = vcombine.low %v2368_v9, %v2429_v47  ;;  %v2131_v9 = vld [vmem:[%s2684_s1 + $0x210] sm:$0xff]  }
  0x3b   : > { %1950 = vmatprep.subr.bf16.mxu1 %v2116_v28  ;;  %1303 = vmatprep.mubr.bf16.mxu1 %v1731_v50  ;;  %v1723_v18 = vcombine.low %v2548_v7, %v2562_v15  ;;  %v2592_v28 = vld [vmem:[%s2305_s12 + $0x48] sm:$0xf]  ;;  %v2133_v50 = vld [vmem:[%s2684_s1 + $0x220] sm:$0xff]  }
  0x3c   : > { %v506_v24 = vshll.u32 %v2592_v28, 16  ;;  %v1715_v31 = vrot.slane %v2592_v28, 9 }
  0x3d   : > { %1911 = vmatpush3.bf16.msra.mxu0 %v2117_v33  ;;  %1238 = vmatprep.mubr.bf16.mxu0 %v1723_v18  ;;  %v2597_v33 = vld [vmem:[%s2305_s12 + $0x4c] sm:$0x1] }
  0x3e   : > { %1951 = vmatpush3.bf16.msra.mxu1 %v2118_v37  ;;  %1912 = vmatprep.subr.bf16.mxu0 %v2121_v61  ;;  %v503_v37 = vshrl.u32 %v2592_v28, 16  ;;  %v512_v40 = vshll.u32 %v2597_v33, 16  ;;  %v1740_v61 = vcombine.low %v2522_v49, %v2592_v28 }
  0x3f   : > { %1952 = vmatprep.subr.bf16.mxu1 %v2122_v62  ;;  %v520_v62 = vrot.slane %v2597_v33, 5 }
  0x40   : > { %1239 = vmatmul.mubr.bf16.gmra.mrb[12].mxu0 %v2565_v16  ;;  %v505_v39 = vrot.slane %v503_v37, 4  ;;  %v514_v46 = vrot.slane %v512_v40, 5 }
  0x41   : > { %1913 = vmatpush3.bf16.msra.mxu0 %v2123_v4  ;;  %1304 = vmatmul.mubr.bf16.gmra.mrb[12].mxu1 %v2552_v10  ;;  %v521_v49 = vsel %vm2342_vm4, %v1715_v31, %v520_v62 }
  0x42   : > { %1953 = vmatpush3.bf16.msra.mxu1 %v2124_v6  ;;  %1914 = vmatprep.subr.bf16.mxu0 %v2125_v11  ;;  %v1742_v0 = vcombine.low %v501_v54, %v521_v49 }
  0x43   : > { %1954 = vmatprep.subr.bf16.mxu1 %v2126_v13  ;;  %1409 = vmatprep.mubr.bf16.mxu1 %v2451_v56  ;;  %v488_v56 = vrot.slane %v486_v25, 5 }
  0x44   : > { %1344 = vmatprep.mubr.bf16.mxu0 %v1736_v21 }
  0x45   : > { %1915 = vmatpush3.bf16.msra.mxu0 %v2127_v17  ;;  %v489_v47 = vor.u32 %v488_v56, %v485_v30 }
  0x46   : > { %1955 = vmatpush3.bf16.msra.mxu1 %v2128_v19  ;;  %1992 = vmatprep.subr.bf16.mxu0 %v2129_v2 }
  0x47   : > { %2016 = vmatprep.subr.bf16.mxu1 %v2129_v2  ;;  %v490_v43 = vrot.slane %v489_v47, 4 }
  0x48   : > { %1345 = vmatmul.mubr.bf16.vlgmr.msra.gmra.mrb[16].mxu0 %v1732_v27 }
  0x49   : > { %1410 = vmatmul.mubr.bf16.vlgmr.msra.gmra.mrb[16].mxu1 %v2443_v53  ;;  %v492_v53 = vshll.u32 %v313_v29, 16  ;;  %1993 = vmatpush3.bf16.msra.mxu0 %v2129_v2 }
  0x4a   : > { %2024 = vmatpush3.bf16.msra.mxu1 %v2129_v2  ;;  %1417 = vmatprep.mubr.bf16.mxu1 %v2511_v35  ;;  %v508_v35 = vrot.slane %v506_v24, 5 }
  0x4b   : > { %2017 = vmatprep.subr.bf16.mxu1 %v2130_v12  ;;  %1994 = vmatprep.subr.bf16.mxu0 %v2130_v12  ;;  %v494_v44 = vrot.slane %v492_v53, 5 }
  0x4c   : > { %1352 = vmatprep.mubr.bf16.mxu0 %v1737_v34  ;;  %v509_v14 = vor.u32 %v508_v35, %v505_v39 }
  0x4d   : > { %1995 = vmatpush3.bf16.msra.mxu0 %v2130_v12 }
  0x4e   : > { %2025 = vmatpush3.bf16.msra.mxu1 %v2130_v12  ;;  %v510_v45 = vrot.slane %v509_v14, 4  ;;  %1996 = vmatprep.subr.bf16.mxu0 %v2131_v9 }
  0x4f   : > { %2018 = vmatprep.subr.bf16.mxu1 %v2131_v9 }
  0x50   : > { %1353 = vmatmul.mubr.bf16.gmra.mrb[20].mxu0 %v1733_v41  ;;  %v515_v51 = vsel %vm2348_vm5, %v510_v45, %v514_v46 }
  0x51   : > { %1418 = vmatmul.mubr.bf16.gmra.mrb[20].mxu1 %v2503_v32  ;;  %v495_v32 = vsel %vm2348_vm5, %v490_v43, %v494_v44  ;;  %1997 = vmatpush3.bf16.msra.mxu0 %v2131_v9 }
  0x52   : > { %2026 = vmatpush3.bf16.msra.mxu1 %v2131_v9  ;;  %1425 = vmatprep.mubr.bf16.mxu1 %v1723_v18  ;;  %v1741_v55 = vcombine.low %v495_v32, %v515_v51  ;;  %v1735_v63 = vcombine.low %v2562_v15, %v495_v32 }
  0x53   : > { %2019 = vmatprep.subr.bf16.mxu1 %v2132_v38  ;;  %1998 = vmatprep.subr.bf16.mxu0 %v2132_v38 }
  0x54   : > { %1360 = vmatprep.mubr.bf16.mxu0 %v1738_v48 }
  0x55   : > { %1999 = vmatpush3.bf16.msra.mxu0 %v2132_v38 }
  0x56   : > { %2027 = vmatpush3.bf16.msra.mxu1 %v2132_v38  ;;  %2000 = vmatprep.subr.bf16.mxu0 %v2133_v50 }
  0x57   : > { %2020 = vmatprep.subr.bf16.mxu1 %v2133_v50 }
  0x58   : > { %1361 = vmatmul.mubr.bf16.gmra.mrb[24].mxu0 %v1734_v57 }
  0x59   : > { %1426 = vmatmul.mubr.bf16.gmra.mrb[24].mxu1 %v2565_v16  ;;  %2001 = vmatpush3.bf16.msra.mxu0 %v2133_v50 }
  0x5a   : > { %2028 = vmatpush3.bf16.msra.mxu1 %v2133_v50  ;;  %1433 = vmatprep.mubr.bf16.mxu1 %v1741_v55 }
  0x5b   : > { %2021 = vmatprep.subr.bf16.mxu1 %v2134_v20  ;;  %2002 = vmatprep.subr.bf16.mxu0 %v2134_v20 }
  0x5c   : > { %1368 = vmatprep.mubr.bf16.mxu0 %v1739_v59 }
  0x5d   : > { %2003 = vmatpush3.bf16.msra.mxu0 %v2134_v20 }
  0x5e   : > { %2029 = vmatpush3.bf16.msra.mxu1 %v2134_v20  ;;  %2004 = vmatprep.subr.bf16.mxu0 %v2136_v60 }
  0x5f   : > { %2022 = vmatprep.subr.bf16.mxu1 %v2136_v60 }
  0x60   : > { %1369 = vmatmul.mubr.bf16.gmra.mrb[28].mxu0 %v1735_v63 }
  0x61   : > { %1434 = vmatmul.mubr.bf16.gmra.mrb[28].mxu1 %v1740_v61  ;;  %2005 = vmatpush3.bf16.msra.mxu0 %v2136_v60 }
  0x62   : > { %2030 = vmatpush3.bf16.msra.mxu1 %v2136_v60  ;;  %2012 = vmatprep.mubr.bf16.mxu1 %v2552_v10 }
  0x63   : > { %2023 = vmatprep.subr.bf16.mxu1 %v2137_v36  ;;  %2006 = vmatprep.subr.bf16.mxu0 %v2137_v36 }
  0x64   : > { %2008 = vmatprep.mubr.bf16.mxu0 %v2418_v42 }
  0x65   : > { %2007 = vmatpush3.bf16.msra.mxu0 %v2137_v36 }
  0x66   : > { %2031 = vmatpush3.bf16.msra.mxu1 %v2137_v36 }
  0x68   : > { %2009 = vmatmul.mubr.bf16.vlgmr.msra.gmra.mrb[32].mxu0 %v2490_v26 }
  0x69   : > { %2013 = vmatmul.mubr.bf16.vlgmr.msra.gmra.mrb[32].mxu1 %v1742_v0 }
  0xfb   : > { %v1836_v3 = vpop.f32.mrb[0].mxu0 }
  0xfc   : > { %v1876_v1 = vpop.f32.mrb[0].mxu1  ;;  %v1837_v4 = vpop.f32.mrb[1].mxu0 }
  0xfd   : > { %v1877_v58 = vpop.f32.mrb[1].mxu1  ;;  %v1838_v7 = vadd.f32 %v1837_v4, %v1836_v3  ;;  %v1839_v8 = vpop.f32.mrb[2].mxu0 }
  0xfe   : > { %v1878_v5 = vadd.f32 %v1877_v58, %v1876_v1  ;;  %v1879_v6 = vpop.f32.mrb[2].mxu1  ;;  %v1840_v11 = vpop.f32.mrb[3].mxu0 }
  0xff   : > { %v1880_v10 = vpop.f32.mrb[3].mxu1  ;;  %v1841_v16 = vadd.f32 %v1840_v11, %v1839_v8 }
 0x100   : > { %v1881_v13 = vadd.f32 %v1880_v10, %v1879_v6  ;;  %v1282_v15 = vadd.f32 %v1878_v5, %v1838_v7 }
 0x102   : > { %v1285_v17 = vadd.f32 %v1881_v13, %v1841_v16 }
 0x103   : > { %v1842_v22 = vpop.f32.mrb[4].mxu0 }
 0x104   : > { %v1882_v18 = vpop.f32.mrb[4].mxu1  ;;  %v1843_v25 = vpop.f32.mrb[5].mxu0 }
 0x105   : > { %v1883_v42 = vpop.f32.mrb[5].mxu1  ;;  %v1844_v12 = vadd.f32 %v1843_v25, %v1842_v22  ;;  %v1845_v30 = vpop.f32.mrb[6].mxu0 }
 0x106   : > { %v1884_v19 = vadd.f32 %v1883_v42, %v1882_v18  ;;  %v1885_v21 = vpop.f32.mrb[6].mxu1  ;;  %v1846_v56 = vpop.f32.mrb[7].mxu0 }
 0x107   : > { %v1886_v2 = vpop.f32.mrb[7].mxu1  ;;  %v1847_v28 = vadd.f32 %v1846_v56, %v1845_v30 }
 0x108   : > { %v1887_v26 = vadd.f32 %v1886_v2, %v1885_v21  ;;  %v1290_v27 = vadd.f32 %v1884_v19, %v1844_v12 }
 0x10a   : > { %v1293_v29 = vadd.f32 %v1887_v26, %v1847_v28 }
 0x10b   : > { %v1848_v47 = vpop.f32.mrb[8].mxu0 }
 0x10c   : > { %v1888_v33 = vpop.f32.mrb[8].mxu1  ;;  %v1849_v39 = vpop.f32.mrb[9].mxu0 }
 0x10d   : > { %v1889_v34 = vpop.f32.mrb[9].mxu1  ;;  %v1850_v35 = vadd.f32 %v1849_v39, %v1848_v47  ;;  %v1851_v40 = vpop.f32.mrb[10].mxu0 }
 0x10e   : > { %v1890_v37 = vadd.f32 %v1889_v34, %v1888_v33  ;;  %v1891_v24 = vpop.f32.mrb[10].mxu1  ;;  %v1852_v38 = vpop.f32.mrb[11].mxu0 }
 0x10f   : > { %v1892_v9 = vpop.f32.mrb[11].mxu1  ;;  %v1853_v41 = vadd.f32 %v1852_v38, %v1851_v40 }
 0x110   : > { %v1893_v53 = vadd.f32 %v1892_v9, %v1891_v24  ;;  %v1298_v14 = vadd.f32 %v1890_v37, %v1850_v35 }
 0x112   : > { %v1301_v43 = vadd.f32 %v1893_v53, %v1853_v41 }
 0x113   : > { %v1854_v52 = vpop.f32.mrb[12].mxu0 }
 0x114   : > { %v1894_v44 = vpop.f32.mrb[12].mxu1  ;;  %v1855_v32 = vpop.f32.mrb[13].mxu0 }
 0x115   : > { %v1895_v45 = vpop.f32.mrb[13].mxu1  ;;  %v1856_v51 = vadd.f32 %v1855_v32, %v1854_v52  ;;  %v1857_v20 = vpop.f32.mrb[14].mxu0 }
 0x116   : > { %v1896_v46 = vadd.f32 %v1895_v45, %v1894_v44  ;;  %v1897_v48 = vpop.f32.mrb[14].mxu1  ;;  %v1858_v54 = vpop.f32.mrb[15].mxu0 }
 0x117   : > { %v1898_v50 = vpop.f32.mrb[15].mxu1  ;;  %v1859_v57 = vadd.f32 %v1858_v54, %v1857_v20 }
 0x118   : > { %v1899_v23 = vadd.f32 %v1898_v50, %v1897_v48  ;;  %v1306_v55 = vadd.f32 %v1896_v46, %v1856_v51 }
 0x11a   : > { %v2648_v61 = vadd.f32 %v1899_v23, %v1859_v57 }
 0x11b   : > { %v1916_v63 = vpop.f32.mrb[16].mxu0 }
 0x11c   : > { %v1956_v59 = vpop.f32.mrb[16].mxu1  ;;  %v1917_v0 = vpop.f32.mrb[17].mxu0 }
 0x11d   : > { %v1957_v60 = vpop.f32.mrb[17].mxu1  ;;  %v1918_v1 = vadd.f32 %v1917_v0, %v1916_v63  ;;  %v1919_v3 = vpop.f32.mrb[18].mxu0 }
 0x11e   : > { %v1958_v31 = vadd.f32 %v1957_v60, %v1956_v59  ;;  %v1959_v62 = vpop.f32.mrb[18].mxu1  ;;  %v1920_v58 = vpop.f32.mrb[19].mxu0 }
 0x11f   : > { %v1960_v36 = vpop.f32.mrb[19].mxu1  ;;  %v1347_v4 = vadd.f32 %v1918_v1, %v1282_v15  ;;  %v1921_v5 = vadd.f32 %v1920_v58, %v1919_v3 }
 0x120   : > { %v1961_v49 = vadd.f32 %v1960_v36, %v1959_v62 }
 0x121   : > { %v1350_v8 = vadd.f32 %v1921_v5, %v1285_v17  ;;  %v1412_v13 = vadd.f32 %v1958_v31, %v1347_v4 }
 0x123   : > { %v1922_v18 = vpop.f32.mrb[20].mxu0  ;;  %v2650_v19 = vadd.f32 %v1961_v49, %v1350_v8  ;;  %v1816_v49 = vld [vmem:[%s2686_s3] ss:$0 sm:$0xff] }
 0x124   : > { %v1962_v6 = vpop.f32.mrb[20].mxu1  ;;  %v1923_v21 = vpop.f32.mrb[21].mxu0 }
 0x125   : > { %v1963_v7 = vpop.f32.mrb[21].mxu1  ;;  %v1924_v2 = vadd.f32 %v1923_v21, %v1922_v18  ;;  %v1925_v26 = vpop.f32.mrb[22].mxu0 }
 0x126   : > { %v1964_v10 = vadd.f32 %v1963_v7, %v1962_v6  ;;  %v1965_v11 = vpop.f32.mrb[22].mxu1  ;;  %v1926_v22 = vpop.f32.mrb[23].mxu0 }
 0x127   : > { %v1966_v16 = vpop.f32.mrb[23].mxu1  ;;  %v1355_v25 = vadd.f32 %v1924_v2, %v1290_v27  ;;  %v1927_v12 = vadd.f32 %v1926_v22, %v1925_v26 }
 0x128   : > { %v1967_v42 = vadd.f32 %v1966_v16, %v1965_v11 }
 0x129   : > { %v1358_v56 = vadd.f32 %v1927_v12, %v1293_v29  ;;  %v1420_v17 = vadd.f32 %v1964_v10, %v1355_v25 }
 0x12b   : > { %v1928_v37 = vpop.f32.mrb[24].mxu0  ;;  %v1423_v9 = vadd.f32 %v1967_v42, %v1358_v56 }
 0x12c   : > { %v1968_v30 = vpop.f32.mrb[24].mxu1  ;;  %v1929_v47 = vpop.f32.mrb[25].mxu0 }
 0x12d   : > { %v1969_v15 = vpop.f32.mrb[25].mxu1  ;;  %v1930_v53 = vadd.f32 %v1929_v47, %v1928_v37  ;;  %v1931_v39 = vpop.f32.mrb[26].mxu0 }
 0x12e   : > { %v1970_v28 = vadd.f32 %v1969_v15, %v1968_v30  ;;  %v1971_v33 = vpop.f32.mrb[26].mxu1  ;;  %v1932_v35 = vpop.f32.mrb[27].mxu0 }
 0x12f   : > { %v1972_v34 = vpop.f32.mrb[27].mxu1  ;;  %v1363_v40 = vadd.f32 %v1930_v53, %v1298_v14  ;;  %v1933_v38 = vadd.f32 %v1932_v35, %v1931_v39  ;;  %v1815_v14 = vld [vmem:[%s2685_s2] ss:$0 sm:$0xff] }
 0x130   : > { %v1973_v24 = vadd.f32 %v1972_v34, %v1971_v33 }
 0x131   : > { %v1366_v27 = vadd.f32 %v1933_v38, %v1301_v43  ;;  %v1428_v48 = vadd.f32 %v1970_v28, %v1363_v40 }
 0x133   : > { %v1934_v50 = vpop.f32.mrb[28].mxu0  ;;  %v1431_v23 = vadd.f32 %v1973_v24, %v1366_v27 }
 0x134   : > { %v1974_v41 = vpop.f32.mrb[28].mxu1  ;;  %v1935_v32 = vpop.f32.mrb[29].mxu0 }
 0x135   : > { %v1975_v44 = vpop.f32.mrb[29].mxu1  ;;  %v1936_v51 = vadd.f32 %v1935_v32, %v1934_v50  ;;  %v1937_v20 = vpop.f32.mrb[30].mxu0 }
 0x136   : > { %v1976_v45 = vadd.f32 %v1975_v44, %v1974_v41  ;;  %v1977_v46 = vpop.f32.mrb[30].mxu1  ;;  %v1938_v54 = vpop.f32.mrb[31].mxu0 }
 0x137   : > { %v1978_v29 = vpop.f32.mrb[31].mxu1  ;;  %v1371_v57 = vadd.f32 %v1936_v51, %v1306_v55  ;;  %v1939_v59 = vadd.f32 %v1938_v54, %v1937_v20 }
 0x138   : > { %v1979_v52 = vadd.f32 %v1978_v29, %v1977_v46 }
 0x139   : > { %v1374_v31 = vadd.f32 %v1939_v59, %v2648_v61  ;;  %v1436_v62 = vadd.f32 %v1976_v45, %v1371_v57 }
 0x13b   : > { %v2010_v1 = vpop.f32.mrb[32].mxu0  ;;  %v1439_v58 = vadd.f32 %v1979_v52, %v1374_v31 }
 0x13c   : > { %v2014_v60 = vpop.f32.mrb[32].mxu1  ;;  %v1485_v5 = vadd.f32 %v2010_v1, %v1420_v17  ;;  %v1476_v6 = vpop.f32.mrb[33].mxu0 }
 0x13d   : > { %v1492_v43 = vpop.f32.mrb[33].mxu1  ;;  %v1501_v55 = vadd.f32 %v2014_v60, %v1436_v62  ;;  %v1477_v8 = vadd.f32 %v1476_v6, %v1412_v13  ;;  %v2011_v61 = vpop.f32.mrb[34].mxu0 }
 0x13e   : > { %v1493_v36 = vadd.f32 %v1492_v43, %v1428_v48  ;;  %v2015_v63 = vpop.f32.mrb[34].mxu1  ;;  %v1516_v16 = vmul.f32 %v1815_v14, %v1485_v5  ;;  %v1488_v18 = vadd.f32 %v2011_v61, %v1423_v9  ;;  %v1479_v42 = vpop.f32.mrb[35].mxu0 }
 0x13f   : > { %v1495_v0 = vpop.f32.mrb[35].mxu1  ;;  %v1520_v7 = vmul.f32 %v1815_v14, %v1501_v55  ;;  %v1504_v11 = vadd.f32 %v2015_v63, %v1439_v58  ;;  %v1514_v26 = vmul.f32 %v1815_v14, %v1477_v8  ;;  %v1480_v30 = vadd.f32 %v1479_v42, %v2650_v19 }
 0x140   : > { %v1518_v3 = vmul.f32 %v1815_v14, %v1493_v36  ;;  %v1496_v4 = vadd.f32 %v1495_v0, %v1431_v23  ;;  %v1531_v13 = vadd.f32 %v1816_v49, %v1516_v16  ;;  %v1517_v12 = vmul.f32 %v1815_v14, %v1488_v18 }
 0x141   : > { %v1535_v2 = vadd.f32 %v1816_v49, %v1520_v7  ;;  %v1521_v25 = vmul.f32 %v1815_v14, %v1504_v11  ;;  %v1529_v28 = vadd.f32 %v1816_v49, %v1514_v26  ;;  %v1515_v37 = vmul.f32 %v1815_v14, %v1480_v30 }
 0x142   : > { %v1533_v10 = vadd.f32 %v1816_v49, %v1518_v3  ;;  %v1519_v21 = vmul.f32 %v1815_v14, %v1496_v4  ;;  %v1539_v17 = vmax.f32 %v1531_v13, 0.0  ;;  %v1532_v34 = vadd.f32 %v1816_v49, %v1517_v12 }
 0x143   : > { %v1543_v56 = vmax.f32 %v1535_v2, 0.0  ;;  %v1536_v33 = vadd.f32 %v1816_v49, %v1521_v25  ;;  %v1537_v9 = vmax.f32 %v1529_v28, 0.0  ;;  %v1530_v19 = vadd.f32 %v1816_v49, %v1515_v37 }
 0x144   : > { %v1541_v22 = vmax.f32 %v1533_v10, 0.0  ;;  %v1534_v15 = vadd.f32 %v1816_v49, %v1519_v21  ;;  %1547 = vst [vmem:[%s2663_s23 + $0x10] sm:$0xff] %v1539_v17  ;;  %v1540_v53 = vmax.f32 %v1532_v34, 0.0 }
 0x145   : > { %1551 = vst [vmem:[%s2663_s23 + $0x30] sm:$0xff] %v1543_v56  ;;  %v1544_v47 = vmax.f32 %v1536_v33, 0.0  ;;  %1545 = vst [vmem:[%s2663_s23] sm:$0xff] %v1537_v9  ;;  %v1538_v39 = vmax.f32 %v1530_v19, 0.0 }
 0x146   : > { %1549 = vst [vmem:[%s2663_s23 + $0x20] sm:$0xff] %v1541_v22  ;;  %v1542_v24 = vmax.f32 %v1534_v15, 0.0  ;;  %1548 = vst [vmem:[%s2663_s23 + $0x18] sm:$0xff] %v1540_v53 }
 0x147   : > { %1552 = vst [vmem:[%s2663_s23 + $0x38] sm:$0xff] %v1544_v47  ;;  %1546 = vst [vmem:[%s2663_s23 + $0x8] sm:$0xff] %v1538_v39 }
 0x148   : > { %1550 = vst [vmem:[%s2663_s23 + $0x28] sm:$0xff] %v1542_v24 }
 0x149 PF: > { %s14_s17 = sadd.s32 1, %s2160_s17   ;;  %s2692_s15 = smov %s2156_s16 }
 0x14a   : > { %p11_p5 = scmp.ge.s32.totalorder %s14_s17, 4   ;;  %s2693_s16 = smov %s2695_s18 }
 0x14c   :  { %13 = sbr.rel (!%p11_p5) target bundleno = 2 (0x2), region = 75 }

</bundles_post_ra>
